<compile_context>
chip_gen: v7x
topology: tpu7x:2x2x1
jax: 0.10.0
libtpu: 0.0.40
codegen_flags: <defaults>
</compile_context>

<pallas_src>
import functools

import jax
import jax.numpy as jnp
from jax.experimental import pallas as pl
from jax.experimental.pallas import tpu as pltpu

NEG_SLOPE = 0.01  # torch.nn.functional.leaky_relu default
LANE = 128
_MIB = 1 << 20


def _ceil_to(x, m):
    return ((x + m - 1) // m) * m


def _pad_axis(a, axis, target):
    size = a.shape[axis]
    if size == target:
        return a
    widths = [(0, 0)] * a.ndim
    widths[axis] = (0, target - size)
    return jnp.pad(a, widths)


# ---------------------------------------------------------------------------
# Kernels
# ---------------------------------------------------------------------------

def _mlp_kernel(n_layers, *refs):
    """Fused path: refs = (x, w0, b0, ..., w_{L-1}, b_{L-1}, o); one batch tile/step.

    Hidden layers: y = leaky_relu(x @ Wt + b); output layer: y = x @ Wt + b.
    MXU matmuls accumulate in f32; bias + activation run in f32 on the VPU;
    intermediate activations are cast back to the weight dtype so bf16 weights
    keep feeding the MXU at full rate."""
    x_ref, o_ref = refs[0], refs[-1]
    params = refs[1:-1]

    h = x_ref[...]
    for i in range(n_layers):
        w = params[2 * i][...]
        b = params[2 * i + 1][...]
        h = jnp.dot(h, w, preferred_element_type=jnp.float32) + b.astype(jnp.float32)
        if i < n_layers - 1:                       # hidden layers only
            h = jnp.maximum(h, NEG_SLOPE * h)      # leaky_relu, single VALU op
            h = h.astype(params[2 * (i + 1)].dtype)
    o_ref[...] = h.astype(o_ref.dtype)


def _mlp_kernel_ksplit(n_layers, *refs):
    """K-split path: refs = (x_tile, w0_ktile, b0, w1, b1, ..., o, acc_scratch).

    grid = (batch_tiles, k_tiles); the first-layer matmul accumulates over the
    "arbitrary" K axis into an f32 VMEM accumulator; the remaining (resident,
    small) layers and the store run only on the last K step."""
    x_ref, o_ref, acc_ref = refs[0], refs[-2], refs[-1]
    params = refs[1:-2]
    k = pl.program_id(1)

    @pl.when(k == 0)
    def _():
        acc_ref[...] = jnp.zeros_like(acc_ref)

    acc_ref[...] += jnp.dot(x_ref[...], params[0][...],
                            preferred_element_type=jnp.float32)

    @pl.when(k == pl.num_programs(1) - 1)
    def _():
        h = acc_ref[...] + params[1][...].astype(jnp.float32)
        if n_layers > 1:
            h = jnp.maximum(h, NEG_SLOPE * h)
            h = h.astype(params[2].dtype)
        for i in range(1, n_layers):
            w = params[2 * i][...]
            b = params[2 * i + 1][...]
            h = jnp.dot(h, w, preferred_element_type=jnp.float32) + b.astype(jnp.float32)
            if i < n_layers - 1:
                h = jnp.maximum(h, NEG_SLOPE * h)
                h = h.astype(params[2 * (i + 1)].dtype)
        o_ref[...] = h.astype(o_ref.dtype)


# ---------------------------------------------------------------------------
# Parameters
# ---------------------------------------------------------------------------

def init_mlp_params(key, ni, no, nhidden, depth, dtype=jnp.float32):
    """torch.nn.Linear-style init (U[-1/sqrt(fan_in), +1/sqrt(fan_in)]).
    Weights returned already transposed to (in, out); biases as (1, out)."""
    params = []
    dims_in = [ni] + [nhidden] * max(depth - 1, 0)
    dims_out = [nhidden] * depth
    for i in range(depth):
        key, kw, kb = jax.random.split(key, 3)
        fan_in = dims_in[i]
        bound = 1.0 / jnp.sqrt(jnp.asarray(fan_in, jnp.float32))
        w = jax.random.uniform(kw, (fan_in, dims_out[i]), dtype, -bound, bound)
        b = jax.random.uniform(kb, (1, dims_out[i]), dtype, -bound, bound)
        params += [w, b]
    last = nhidden if depth > 0 else ni
    key, kw, kb = jax.random.split(key, 3)
    bound = 1.0 / jnp.sqrt(jnp.asarray(last, jnp.float32))
    w = jax.random.uniform(kw, (last, no), dtype, -bound, bound)
    b = jax.random.uniform(kb, (1, no), dtype, -bound, bound)
    params += [w, b]
    return params


def _pad_params_to_lanes(params):
    """Zero-pad each layer's output width (and the next layer's input rows) to a
    multiple of 128 lanes.  Exact: padded columns stay zero through leaky_relu
    and contribute nothing downstream; padded outputs are sliced off later."""
    n_layers = len(params) // 2
    padded = []
    prev_out_pad = None
    for i in range(n_layers):
        w, b = params[2 * i], params[2 * i + 1]
        out_pad = _ceil_to(w.shape[1], LANE)
        if i > 0:
            w = _pad_axis(w, 0, prev_out_pad)
        w = _pad_axis(w, 1, out_pad)
        b = _pad_axis(b.reshape(1, -1), 1, out_pad)
        padded += [w, b]
        prev_out_pad = out_pad
    return padded


# ---------------------------------------------------------------------------
# Resource sizing
# ---------------------------------------------------------------------------

def _vmem_budget_and_limit():
    """Generation-aware (budget, vmem_limit_cap) in bytes."""
    cap = None
    try:
        info = pltpu.get_tpu_info()
        cap = int(getattr(info, "vmem_capacity_bytes", 0)) or None
    except Exception:
        cap = None
    if cap is None:
        cap = 64 * _MIB                      # unknown -> assume v7x-class (safest)
    if cap >= 96 * _MIB:                     # v5e / v6e: 128 MiB physical VMEM
        return 100 * _MIB, 116 * _MIB
    return 40 * _MIB, 56 * _MIB              # v7x-class: 64 MiB physical VMEM


def _layer_widths(params_p, ni):
    n_layers = len(params_p) // 2
    outs = [params_p[2 * i].shape[1] for i in range(n_layers)]
    ins = [ni] + outs[:-1]
    return ins, outs


def _choose_batch_tile(n, ni, params_p, budget, x_it, out_it, block_n):
    """Direct solve for the batch tile assuming single-buffered weights.
    Returns None when the resident weights alone don't fit -> use K-split."""
    gran = 256                               # wide MXU M-dim (also a 128-multiple for v5e)
    n8 = _ceil_to(n, 8)
    ins, outs = _layer_widths(params_p, ni)
    no_pad = outs[-1]
    w_bytes = sum(int(p.size) * p.dtype.itemsize for p in params_p)     # Buffered(1)
    act_row = max((ins[i] + outs[i]) * 4 for i in range(len(outs)))     # live f32 activations
    per_row = 2 * ni * x_it + 2 * no_pad * out_it + act_row             # dbl-buffered x / out
    avail = int(budget * 0.88) - w_bytes                                # ~12% Mosaic headroom
    if avail < per_row * 8:
        return None
    tn = min(block_n, avail // per_row)
    tn = (tn // gran) * gran if tn >= gran else max(8, (tn // 8) * 8)
    if n8 >= 2 * gran:                       # >=2 steps: megacore sharding + DMA overlap
        steps = 4 if n8 >= 4 * gran else 2
        tn = min(tn, _ceil_to(-(-n8 // steps), gran))
    return max(8, min(tn, n8))


def _choose_ksplit_tiles(n, ni, params_p, budget, x_it, out_it, block_n, block_k):
    """Pick (tn, tk) for the K-split path: rest-of-network weights stay resident
    (single-buffered); the first-layer weight streams in (tk, h0) tiles."""
    ins, outs = _layer_widths(params_p, ni)
    h0_pad, no_pad = outs[0], outs[-1]
    wdt = params_p[0].dtype.itemsize
    rest_bytes = sum(int(p.size) * p.dtype.itemsize for p in params_p[1:])
    n8 = _ceil_to(n, 8)
    tn = max(8, _ceil_to(min(block_n, n8, 256), 8))
    if block_k is not None:
        tk = _ceil_to(block_k, LANE)
    else:
        act_row = (max((ins[i] + outs[i]) * 4 for i in range(1, len(outs)))
                   if len(outs) > 1 else 0)
        per_row_fixed = h0_pad * 4 + 2 * no_pad * out_it + act_row       # acc + out + acts
        rem = int(budget * 0.85) - rest_bytes - tn * per_row_fixed
        denom = 2 * (h0_pad * wdt + tn * x_it)                           # per-K: w0 + x (dbl-buf)
        tk = (rem // denom) // LANE * LANE if rem > denom * LANE else LANE
        tk = max(LANE, min(tk, 2048))
    tk = min(tk, _ceil_to(ni, LANE))
    return tn, tk


# ---------------------------------------------------------------------------
# Forward
# ---------------------------------------------------------------------------

def mlp_forward(x, params, depth, flatten=True, block_n=1024, block_k=None,
                compute_dtype=None, x_buffers=None):
    """Fused MLP forward.

    block_k:       force the first-layer K-split path with this K tile (otherwise
                   K-split is used only when resident weights exceed the VMEM budget).
    compute_dtype: optional bf16 fast path (cast weights/activations; f32 MXU accumulate).
    x_buffers:     optional deeper pipelining for the streamed x tiles (e.g. 3 on v5e
                   if the x-tile DMA is exposed); default leaves the 2-deep pipeline.
    """
    del depth  # layer count derived from params
    if flatten:
        x = x.reshape(x.shape[0], -1)  # matches torch .view(N, -1), NCHW row-major
    out_dtype = x.dtype
    if compute_dtype is not None:
        x = x.astype(compute_dtype)
        params = [p.astype(compute_dtype) for p in params]
    n, ni = x.shape
    no = params[-1].shape[-1]
    out_it = jnp.dtype(out_dtype).itemsize
    x_it = x.dtype.itemsize

    params_p = _pad_params_to_lanes(params)
    n_layers = len(params_p) // 2
    no_pad = params_p[-1].shape[-1]
    budget, limit_cap = _vmem_budget_and_limit()

    tn = None if block_k is not None else _choose_batch_tile(
        n, ni, params_p, budget, x_it, out_it, block_n)
    use_ksplit = tn is None

    def x_spec(shape, index_map):
        if x_buffers is not None and x_buffers != 2:
            return pl.BlockSpec(shape, index_map, pipeline_mode=pl.Buffered(x_buffers))
        return pl.BlockSpec(shape, index_map)

    def const_spec(shape, single_buffer):
        # Constant index_map -> block never changes; single-buffer it so resident
        # weight VMEM is 1x (not the default 2x).
        if single_buffer:
            return pl.BlockSpec(shape, lambda *_: (0, 0), pipeline_mode=pl.Buffered(1))
        return pl.BlockSpec(shape, lambda *_: (0, 0))

    if not use_ksplit:
        # -------- Fused path: all weights VMEM-resident, 1-D parallel batch grid.
        n_pad = _ceil_to(max(n, 1), tn)
        x_p = _pad_axis(x, 0, n_pad)
        grid = (n_pad // tn,)
        ins, outs = _layer_widths(params_p, ni)
        act_row = max((ins[i] + outs[i]) * 4 for i in range(n_layers))
        w_bytes = sum(int(p.size) * p.dtype.itemsize for p in params_p)

        def run(single_buffer):
            w_mult = 1 if single_buffer else 2
            est = (w_mult * w_bytes + 2 * tn * ni * x_it
                   + 2 * tn * no_pad * out_it + tn * act_row)
            vmem_limit = int(min(max(int(est * 1.25), 32 * _MIB), limit_cap))
            in_specs = [x_spec((tn, ni), lambda i: (i, 0))]
            in_specs += [const_spec(p.shape, single_buffer) for p in params_p]
            out_specs = pl.BlockSpec((tn, no_pad), lambda i: (i, 0))
            flops = sum(2 * n_pad * params_p[2 * l].shape[0] * params_p[2 * l].shape[1]
                        for l in range(n_layers))
            bytes_accessed = (int(x_p.size) * x_it + n_pad * no_pad * out_it
                              + w_mult * w_bytes)
            return pl.pallas_call(
                functools.partial(_mlp_kernel, n_layers),
                out_shape=jax.ShapeDtypeStruct((n_pad, no_pad), out_dtype),
                grid=grid,
                in_specs=in_specs,
                out_specs=out_specs,
                compiler_params=pltpu.CompilerParams(
                    dimension_semantics=("parallel",),
                    vmem_limit_bytes=vmem_limit),
                cost_estimate=pl.CostEstimate(
                    flops=flops, transcendentals=0, bytes_accessed=bytes_accessed),
            )(x_p, *params_p)
    else:
        # -------- K-split path: first-layer weight streamed over a K reduction axis.
        # TODO(synk): if the *hidden/output* weights themselves exceed VMEM, they would
        # additionally need tiling over their output dim; not implemented here.
        tn, tk = _choose_ksplit_tiles(n, ni, params_p, budget, x_it, out_it,
                                      block_n, block_k)
        grid_k = -(-ni // tk)
        ni_pad = grid_k * tk
        n_pad = _ceil_to(max(n, 1), tn)
        x_p = _pad_axis(_pad_axis(x, 1, ni_pad), 0, n_pad)
        params_k = list(params_p)
        params_k[0] = _pad_axis(params_k[0], 0, ni_pad)   # zero K rows: exact
        h0_pad = params_k[0].shape[1]
        grid = (n_pad // tn, grid_k)
        ins, outs = _layer_widths(params_k, ni_pad)
        act_row = (max((ins[i] + outs[i]) * 4 for i in range(1, n_layers))
                   if n_layers > 1 else 0)
        rest_bytes = sum(int(p.size) * p.dtype.itemsize for p in params_k[1:])
        wdt = params_k[0].dtype.itemsize

        def run(single_buffer):
            w_mult = 1 if single_buffer else 2
            est = (w_mult * rest_bytes + 2 * tk * h0_pad * wdt + 2 * tn * tk * x_it
                   + 2 * tn * no_pad * out_it + tn * h0_pad * 4 + tn * act_row)
            vmem_limit = int(min(max(int(est * 1.25), 32 * _MIB), limit_cap))
            in_specs = [x_spec((tn, tk), lambda i, k: (i, k)),
                        pl.BlockSpec((tk, h0_pad), lambda i, k: (k, 0))]
            in_specs += [const_spec(p.shape, single_buffer) for p in params_k[1:]]
            out_specs = pl.BlockSpec((tn, no_pad), lambda i, k: (i, 0))
            flops = 2 * n_pad * ni_pad * h0_pad + sum(
                2 * n_pad * params_k[2 * l].shape[0] * params_k[2 * l].shape[1]
                for l in range(1, n_layers))
            bytes_accessed = (int(x_p.size) * x_it + n_pad * no_pad * out_it
                              + int(params_k[0].size) * wdt + w_mult * rest_bytes)
            return pl.pallas_call(
                functools.partial(_mlp_kernel_ksplit, n_layers),
                out_shape=jax.ShapeDtypeStruct((n_pad, no_pad), out_dtype),
                grid=grid,
                in_specs=in_specs,
                out_specs=out_specs,
                scratch_shapes=[pltpu.VMEM((tn, h0_pad), jnp.float32)],
                compiler_params=pltpu.CompilerParams(
                    dimension_semantics=("parallel", "arbitrary"),
                    vmem_limit_bytes=vmem_limit),
                cost_estimate=pl.CostEstimate(
                    flops=flops, transcendentals=0, bytes_accessed=bytes_accessed),
            )(x_p, *params_k)

    try:
        out_p = run(True)
    except Exception:
        # Fallback for jax builds that reject pl.Buffered(1) on resident blocks:
        # recompile with default double-buffered weights (limit recomputed accordingly).
        out_p = run(False)
    return out_p[:n, :no]


def mlp_reference(x, params, depth, flatten=True):
    """Pure-JAX reference for correctness checking."""
    del depth
    if flatten:
        x = x.reshape(x.shape[0], -1)
    n_layers = len(params) // 2
    h = x.astype(jnp.float32)
    for i in range(n_layers):
        h = h @ params[2 * i].astype(jnp.float32) + params[2 * i + 1].astype(jnp.float32)
        if i < n_layers - 1:
            h = jnp.where(h > 0, h, NEG_SLOPE * h)
    return h


if __name__ == "__main__":
    key = jax.random.PRNGKey(0)

    # --- Test 1: shapes implied by the module (tiny batch, NCHW input, flatten) ---
    N, C, H, W = 2, 4, 16, 16
    ni, nhidden, no, depth = C * H * W, 32, 10, 2
    key, kx, kp = jax.random.split(key, 3)
    x = jax.random.normal(kx, (N, C, H, W), jnp.float32)
    params = init_mlp_params(kp, ni, no, nhidden, depth)
    out = jax.block_until_ready(mlp_forward(x, params, depth, flatten=True))
    ref = mlp_reference(x, params, depth, flatten=True)
    assert out.shape == (N, no), out.shape
    assert jnp.allclose(out, ref, atol=1e-4, rtol=1e-4), float(jnp.max(jnp.abs(out - ref)))

    # --- Test 2: multi-step batch grid (grid=2), non-128-multiple ni, depth=3 ---
    N2, C2, H2, W2 = 64, 3, 8, 8
    ni2, nh2, no2, depth2 = C2 * H2 * W2, 32, 10, 3
    key, kx2, kp2 = jax.random.split(key, 3)
    x2 = jax.random.normal(kx2, (N2, C2, H2, W2), jnp.float32)
    params2 = init_mlp_params(kp2, ni2, no2, nh2, depth2)
    out2 = jax.block_until_ready(mlp_forward(x2, params2, depth2, flatten=True, block_n=32))
    ref2 = mlp_reference(x2, params2, depth2, flatten=True)
    assert out2.shape == (N2, no2), out2.shape
    assert jnp.allclose(out2, ref2, atol=1e-4, rtol=1e-4), float(jnp.max(jnp.abs(out2 - ref2)))

    # --- Test 3: depth == 0 path (just the output Linear on flattened input) ---
    params0 = init_mlp_params(jax.random.PRNGKey(3), ni, no, nhidden, 0)
    out0 = jax.block_until_ready(mlp_forward(x, params0, 0, flatten=True))
    ref0 = mlp_reference(x, params0, 0, flatten=True)
    assert out0.shape == (N, no), out0.shape
    assert jnp.allclose(out0, ref0, atol=1e-4, rtol=1e-4), float(jnp.max(jnp.abs(out0 - ref0)))

    # --- Test 4: forced first-layer K-split path (grid = (2 batch, 4 K) steps) ---
    N4, C4, H4, W4 = 32, 1, 32, 32
    ni4, nh4, no4, depth4 = C4 * H4 * W4, 64, 10, 2
    key, kx4, kp4 = jax.random.split(key, 3)
    x4 = jax.random.normal(kx4, (N4, C4, H4, W4), jnp.float32)
    params4 = init_mlp_params(kp4, ni4, no4, nh4, depth4)
    out4 = jax.block_until_ready(
        mlp_forward(x4, params4, depth4, flatten=True, block_n=16, block_k=256))
    ref4 = mlp_reference(x4, params4, depth4, flatten=True)
    assert out4.shape == (N4, no4), out4.shape
    assert jnp.allclose(out4, ref4, atol=1e-4, rtol=1e-4), float(jnp.max(jnp.abs(out4 - ref4)))

    # --- Test 5: bf16 fast path (MXU bf16 operands, f32 accumulation) ---
    out5 = jax.block_until_ready(
        mlp_forward(x, params, depth, flatten=True, compute_dtype=jnp.bfloat16))
    assert out5.shape == (N, no), out5.shape
    assert jnp.allclose(out5, ref, atol=5e-2, rtol=5e-2), float(jnp.max(jnp.abs(out5 - ref)))

    print("KERNEL_OK")
</pallas_src>

<mosaic_0001>
module attributes {stable_mosaic.version = 11 : i64} {
  func.func @_mlp_kernel(%arg0: i32, %arg1: memref<8x1024xf32, #tpu.memory_space<vmem>>, %arg2: memref<1024x128xf32, #tpu.memory_space<vmem>>, %arg3: memref<1x128xf32, #tpu.memory_space<vmem>>, %arg4: memref<128x128xf32, #tpu.memory_space<vmem>>, %arg5: memref<1x128xf32, #tpu.memory_space<vmem>>, %arg6: memref<128x128xf32, #tpu.memory_space<vmem>>, %arg7: memref<1x128xf32, #tpu.memory_space<vmem>>, %arg8: memref<8x128xf32, #tpu.memory_space<vmem>>) attributes {dimension_semantics = [#tpu.dimension_semantics<parallel>], iteration_bounds = array<i64: 1>, scalar_prefetch = 0 : i64, scratch_operands = 0 : i64, tpu.core_type = #tpu.core_type<tc>, window_params = [{transform_indices = @transform_0, window_bounds = array<i64: 8, 1024>}, {pipeline_mode = #tpu.pipeline_mode<synchronous>, transform_indices = @transform_1, window_bounds = array<i64: 1024, 128>}, {pipeline_mode = #tpu.pipeline_mode<synchronous>, transform_indices = @transform_2, window_bounds = array<i64: 1, 128>}, {pipeline_mode = #tpu.pipeline_mode<synchronous>, transform_indices = @transform_3, window_bounds = array<i64: 128, 128>}, {pipeline_mode = #tpu.pipeline_mode<synchronous>, transform_indices = @transform_4, window_bounds = array<i64: 1, 128>}, {pipeline_mode = #tpu.pipeline_mode<synchronous>, transform_indices = @transform_5, window_bounds = array<i64: 128, 128>}, {pipeline_mode = #tpu.pipeline_mode<synchronous>, transform_indices = @transform_6, window_bounds = array<i64: 1, 128>}, {transform_indices = @transform_7, window_bounds = array<i64: 8, 128>}]} {
    %c0 = arith.constant 0 : index
    %c0_0 = arith.constant 0 : index
    %0 = vector.load %arg1[%c0, %c0_0] : memref<8x1024xf32, #tpu.memory_space<vmem>>, vector<8x1024xf32>
    %c0_1 = arith.constant 0 : index
    %c0_2 = arith.constant 0 : index
    %1 = vector.load %arg2[%c0_1, %c0_2] : memref<1024x128xf32, #tpu.memory_space<vmem>>, vector<1024x128xf32>
    %c0_3 = arith.constant 0 : index
    %c0_4 = arith.constant 0 : index
    %2 = vector.load %arg3[%c0_3, %c0_4] : memref<1x128xf32, #tpu.memory_space<vmem>>, vector<1x128xf32>
    %cst = arith.constant dense<0.000000e+00> : vector<8x128xf32>
    %3 = tpu.matmul %0, %1, %cst {dimension_numbers = #tpu.dot_dimension_numbers<[1], [0], [0], [1], [0, 0, 1, 1], [], []>} : vector<8x1024xf32>, vector<1024x128xf32>, vector<8x128xf32> -> vector<8x128xf32>
    %4 = vector.broadcast %2 : vector<1x128xf32> to vector<8x128xf32>
    %5 = arith.addf %3, %4 : vector<8x128xf32>
    %cst_5 = arith.constant 0.00999999977 : f32
    %6 = vector.broadcast %cst_5 : f32 to vector<8x128xf32>
    %7 = arith.mulf %6, %5 : vector<8x128xf32>
    %8 = arith.maximumf %5, %7 : vector<8x128xf32>
    %c0_6 = arith.constant 0 : index
    %c0_7 = arith.constant 0 : index
    %9 = vector.load %arg4[%c0_6, %c0_7] : memref<128x128xf32, #tpu.memory_space<vmem>>, vector<128x128xf32>
    %c0_8 = arith.constant 0 : index
    %c0_9 = arith.constant 0 : index
    %10 = vector.load %arg5[%c0_8, %c0_9] : memref<1x128xf32, #tpu.memory_space<vmem>>, vector<1x128xf32>
    %cst_10 = arith.constant dense<0.000000e+00> : vector<8x128xf32>
    %11 = tpu.matmul %8, %9, %cst_10 {dimension_numbers = #tpu.dot_dimension_numbers<[1], [0], [0], [1], [0, 0, 1, 1], [], []>} : vector<8x128xf32>, vector<128x128xf32>, vector<8x128xf32> -> vector<8x128xf32>
    %12 = vector.broadcast %10 : vector<1x128xf32> to vector<8x128xf32>
    %13 = arith.addf %11, %12 : vector<8x128xf32>
    %cst_11 = arith.constant 0.00999999977 : f32
    %14 = vector.broadcast %cst_11 : f32 to vector<8x128xf32>
    %15 = arith.mulf %14, %13 : vector<8x128xf32>
    %16 = arith.maximumf %13, %15 : vector<8x128xf32>
    %c0_12 = arith.constant 0 : index
    %c0_13 = arith.constant 0 : index
    %17 = vector.load %arg6[%c0_12, %c0_13] : memref<128x128xf32, #tpu.memory_space<vmem>>, vector<128x128xf32>
    %c0_14 = arith.constant 0 : index
    %c0_15 = arith.constant 0 : index
    %18 = vector.load %arg7[%c0_14, %c0_15] : memref<1x128xf32, #tpu.memory_space<vmem>>, vector<1x128xf32>
    %cst_16 = arith.constant dense<0.000000e+00> : vector<8x128xf32>
    %19 = tpu.matmul %16, %17, %cst_16 {dimension_numbers = #tpu.dot_dimension_numbers<[1], [0], [0], [1], [0, 0, 1, 1], [], []>} : vector<8x128xf32>, vector<128x128xf32>, vector<8x128xf32> -> vector<8x128xf32>
    %20 = vector.broadcast %18 : vector<1x128xf32> to vector<8x128xf32>
    %21 = arith.addf %19, %20 : vector<8x128xf32>
    %c0_17 = arith.constant 0 : index
    %c0_18 = arith.constant 0 : index
    %22 = vector.load %arg8[%c0_17, %c0_18] : memref<8x128xf32, #tpu.memory_space<vmem>>, vector<8x128xf32>
    tpu.vector_store %arg8[%c0_17, %c0_18], %21 {strides = array<i32>} : memref<8x128xf32, #tpu.memory_space<vmem>>, vector<8x128xf32>,
    return
  }
  func.func @transform_0(%arg0: i32) -> (i32, i32) {
    %c0_i32 = arith.constant 0 : i32
    %c0_i32_0 = arith.constant 0 : i32
    return %arg0, %c0_i32 : i32, i32
  }
  func.func @transform_1(%arg0: i32) -> (i32, i32) {
    %c0_i32 = arith.constant 0 : i32
    %c0_i32_0 = arith.constant 0 : i32
    %c0_i32_1 = arith.constant 0 : i32
    return %c0_i32, %c0_i32_0 : i32, i32
  }
  func.func @transform_2(%arg0: i32) -> (i32, i32) {
    %c0_i32 = arith.constant 0 : i32
    %c0_i32_0 = arith.constant 0 : i32
    %c0_i32_1 = arith.constant 0 : i32
    return %c0_i32, %c0_i32_0 : i32, i32
  }
  func.func @transform_3(%arg0: i32) -> (i32, i32) {
    %c0_i32 = arith.constant 0 : i32
    %c0_i32_0 = arith.constant 0 : i32
    %c0_i32_1 = arith.constant 0 : i32
    return %c0_i32, %c0_i32_0 : i32, i32
  }
  func.func @transform_4(%arg0: i32) -> (i32, i32) {
    %c0_i32 = arith.constant 0 : i32
    %c0_i32_0 = arith.constant 0 : i32
    %c0_i32_1 = arith.constant 0 : i32
    return %c0_i32, %c0_i32_0 : i32, i32
  }
  func.func @transform_5(%arg0: i32) -> (i32, i32) {
    %c0_i32 = arith.constant 0 : i32
    %c0_i32_0 = arith.constant 0 : i32
    %c0_i32_1 = arith.constant 0 : i32
    return %c0_i32, %c0_i32_0 : i32, i32
  }
  func.func @transform_6(%arg0: i32) -> (i32, i32) {
    %c0_i32 = arith.constant 0 : i32
    %c0_i32_0 = arith.constant 0 : i32
    %c0_i32_1 = arith.constant 0 : i32
    return %c0_i32, %c0_i32_0 : i32, i32
  }
  func.func @transform_7(%arg0: i32) -> (i32, i32) {
    %c0_i32 = arith.constant 0 : i32
    %c0_i32_0 = arith.constant 0 : i32
    return %arg0, %c0_i32 : i32, i32
  }
}

module attributes {stable_mosaic.version = 11 : i64} {
  func.func @_mlp_kernel(%arg0: i32, %arg1: memref<8x1024xf32, #tpu.memory_space<vmem>>, %arg2: memref<1024x128xf32, #tpu.memory_space<vmem>>, %arg3: memref<1x128xf32, #tpu.memory_space<vmem>>, %arg4: memref<128x128xf32, #tpu.memory_space<vmem>>, %arg5: memref<1x128xf32, #tpu.memory_space<vmem>>, %arg6: memref<128x128xf32, #tpu.memory_space<vmem>>, %arg7: memref<1x128xf32, #tpu.memory_space<vmem>>, %arg8: memref<8x128xf32, #tpu.memory_space<vmem>>) attributes {dimension_semantics = [#tpu.dimension_semantics<parallel>], iteration_bounds = array<i64: 1>, scalar_prefetch = 0 : i64, scratch_operands = 0 : i64, tpu.core_type = #tpu.core_type<tc>, window_params = [{transform_indices = @transform_0, window_bounds = array<i64: 8, 1024>}, {pipeline_mode = #tpu.pipeline_mode<synchronous>, transform_indices = @transform_1, window_bounds = array<i64: 1024, 128>}, {pipeline_mode = #tpu.pipeline_mode<synchronous>, transform_indices = @transform_2, window_bounds = array<i64: 1, 128>}, {pipeline_mode = #tpu.pipeline_mode<synchronous>, transform_indices = @transform_3, window_bounds = array<i64: 128, 128>}, {pipeline_mode = #tpu.pipeline_mode<synchronous>, transform_indices = @transform_4, window_bounds = array<i64: 1, 128>}, {pipeline_mode = #tpu.pipeline_mode<synchronous>, transform_indices = @transform_5, window_bounds = array<i64: 128, 128>}, {pipeline_mode = #tpu.pipeline_mode<synchronous>, transform_indices = @transform_6, window_bounds = array<i64: 1, 128>}, {transform_indices = @transform_7, window_bounds = array<i64: 8, 128>}]} {
    %c0 = arith.constant 0 : index
    %c0_0 = arith.constant 0 : index
    %0 = vector.load %arg1[%c0, %c0_0] : memref<8x1024xf32, #tpu.memory_space<vmem>>, vector<8x1024xf32>
    %c0_1 = arith.constant 0 : index
    %c0_2 = arith.constant 0 : index
    %1 = vector.load %arg2[%c0_1, %c0_2] : memref<1024x128xf32, #tpu.memory_space<vmem>>, vector<1024x128xf32>
    %c0_3 = arith.constant 0 : index
    %c0_4 = arith.constant 0 : index
    %2 = vector.load %arg3[%c0_3, %c0_4] : memref<1x128xf32, #tpu.memory_space<vmem>>, vector<1x128xf32>
    %cst = arith.constant dense<0.000000e+00> : vector<8x128xf32>
    %3 = tpu.matmul %0, %1, %cst {dimension_numbers = #tpu.dot_dimension_numbers<[1], [0], [0], [1], [0, 0, 1, 1], [], []>} : vector<8x1024xf32>, vector<1024x128xf32>, vector<8x128xf32> -> vector<8x128xf32>
    %4 = vector.broadcast %2 : vector<1x128xf32> to vector<8x128xf32>
    %5 = arith.addf %3, %4 : vector<8x128xf32>
    %cst_5 = arith.constant 0.00999999977 : f32
    %6 = vector.broadcast %cst_5 : f32 to vector<8x128xf32>
    %7 = arith.mulf %6, %5 : vector<8x128xf32>
    %8 = arith.maximumf %5, %7 : vector<8x128xf32>
    %c0_6 = arith.constant 0 : index
    %c0_7 = arith.constant 0 : index
    %9 = vector.load %arg4[%c0_6, %c0_7] : memref<128x128xf32, #tpu.memory_space<vmem>>, vector<128x128xf32>
    %c0_8 = arith.constant 0 : index
    %c0_9 = arith.constant 0 : index
    %10 = vector.load %arg5[%c0_8, %c0_9] : memref<1x128xf32, #tpu.memory_space<vmem>>, vector<1x128xf32>
    %cst_10 = arith.constant dense<0.000000e+00> : vector<8x128xf32>
    %11 = tpu.matmul %8, %9, %cst_10 {dimension_numbers = #tpu.dot_dimension_numbers<[1], [0], [0], [1], [0, 0, 1, 1], [], []>} : vector<8x128xf32>, vector<128x128xf32>, vector<8x128xf32> -> vector<8x128xf32>
    %12 = vector.broadcast %10 : vector<1x128xf32> to vector<8x128xf32>
    %13 = arith.addf %11, %12 : vector<8x128xf32>
    %cst_11 = arith.constant 0.00999999977 : f32
    %14 = vector.broadcast %cst_11 : f32 to vector<8x128xf32>
    %15 = arith.mulf %14, %13 : vector<8x128xf32>
    %16 = arith.maximumf %13, %15 : vector<8x128xf32>
    %c0_12 = arith.constant 0 : index
    %c0_13 = arith.constant 0 : index
    %17 = vector.load %arg6[%c0_12, %c0_13] : memref<128x128xf32, #tpu.memory_space<vmem>>, vector<128x128xf32>
    %c0_14 = arith.constant 0 : index
    %c0_15 = arith.constant 0 : index
    %18 = vector.load %arg7[%c0_14, %c0_15] : memref<1x128xf32, #tpu.memory_space<vmem>>, vector<1x128xf32>
    %cst_16 = arith.constant dense<0.000000e+00> : vector<8x128xf32>
    %19 = tpu.matmul %16, %17, %cst_16 {dimension_numbers = #tpu.dot_dimension_numbers<[1], [0], [0], [1], [0, 0, 1, 1], [], []>} : vector<8x128xf32>, vector<128x128xf32>, vector<8x128xf32> -> vector<8x128xf32>
    %20 = vector.broadcast %18 : vector<1x128xf32> to vector<8x128xf32>
    %21 = arith.addf %19, %20 : vector<8x128xf32>
    %c0_17 = arith.constant 0 : index
    %c0_18 = arith.constant 0 : index
    %22 = vector.load %arg8[%c0_17, %c0_18] : memref<8x128xf32, #tpu.memory_space<vmem>>, vector<8x128xf32>
    tpu.vector_store %arg8[%c0_17, %c0_18], %21 {strides = array<i32>} : memref<8x128xf32, #tpu.memory_space<vmem>>, vector<8x128xf32>,
    return
  }
  func.func @transform_0(%arg0: i32) -> (i32, i32) {
    %c0_i32 = arith.constant 0 : i32
    %c0_i32_0 = arith.constant 0 : i32
    return %arg0, %c0_i32 : i32, i32
  }
  func.func @transform_1(%arg0: i32) -> (i32, i32) {
    %c0_i32 = arith.constant 0 : i32
    %c0_i32_0 = arith.constant 0 : i32
    %c0_i32_1 = arith.constant 0 : i32
    return %c0_i32, %c0_i32_0 : i32, i32
  }
  func.func @transform_2(%arg0: i32) -> (i32, i32) {
    %c0_i32 = arith.constant 0 : i32
    %c0_i32_0 = arith.constant 0 : i32
    %c0_i32_1 = arith.constant 0 : i32
    return %c0_i32, %c0_i32_0 : i32, i32
  }
  func.func @transform_3(%arg0: i32) -> (i32, i32) {
    %c0_i32 = arith.constant 0 : i32
    %c0_i32_0 = arith.constant 0 : i32
    %c0_i32_1 = arith.constant 0 : i32
    return %c0_i32, %c0_i32_0 : i32, i32
  }
  func.func @transform_4(%arg0: i32) -> (i32, i32) {
    %c0_i32 = arith.constant 0 : i32
    %c0_i32_0 = arith.constant 0 : i32
    %c0_i32_1 = arith.constant 0 : i32
    return %c0_i32, %c0_i32_0 : i32, i32
  }
  func.func @transform_5(%arg0: i32) -> (i32, i32) {
    %c0_i32 = arith.constant 0 : i32
    %c0_i32_0 = arith.constant 0 : i32
    %c0_i32_1 = arith.constant 0 : i32
    return %c0_i32, %c0_i32_0 : i32, i32
  }
  func.func @transform_6(%arg0: i32) -> (i32, i32) {
    %c0_i32 = arith.constant 0 : i32
    %c0_i32_0 = arith.constant 0 : i32
    %c0_i32_1 = arith.constant 0 : i32
    return %c0_i32, %c0_i32_0 : i32, i32
  }
  func.func @transform_7(%arg0: i32) -> (i32, i32) {
    %c0_i32 = arith.constant 0 : i32
    %c0_i32_0 = arith.constant 0 : i32
    return %arg0, %c0_i32 : i32, i32
  }
}

</mosaic_0001>

<bundles_post_ra>
// kernel: tpu_custom_call.1
= control target key start
LH: loop header
LB: loop body
LE: loop exit
PB: predicated region body
PF: predicated region fallthrough
CT: control target
= control target key end

     0   :  { %12 = vsyncpa [#allocation3], 0  ;;  %s1406_s0 = inlined_call_operand.hbm [shape: f32[8,1024], index: 0, kind: input, shape index: {}]   ;;  %s1407_s1 = inlined_call_operand.hbm [shape: f32[1024,128], index: 1, kind: input, shape index: {}]   ;;  %s1408_s2 = inlined_call_operand.vmem [shape: f32[1,128], index: 2, kind: input, shape index: {}]   ;;  %s1409_s3 = inlined_call_operand.hbm [shape: f32[128,128], index: 3, kind: input, shape index: {}]   ;;  %s1410_s4 = inlined_call_operand.vmem [shape: f32[1,128], index: 4, kind: input, shape index: {}]   ;;  %s1411_s5 = inlined_call_operand.hbm [shape: f32[128,128], index: 5, kind: input, shape index: {}]   ;;  %s1412_s6 = inlined_call_operand.vmem [shape: f32[1,128], index: 6, kind: input, shape index: {}]   ;;  %s1413_s7 = inlined_call_operand.hbm [shape: f32[8,128], index: 7, kind: output, shape index: {}]  }
   0x1   :  { %13 = vsyncpa [#allocation6], 0 }
   0x2   :  { %14 = vsyncpa [#allocation9], 0 }
   0x3   :  { %15 = vsyncpa [#allocation4], 0  ;;  %s1262_s24 = smov [#allocation5]   ;;  %s1144_s28 = scalar_lea.hbm %s1407_s1, 16384 }
   0x4   :  { %s31_s25 = sshll.u32 %s1262_s24, 4  ;;  %p1145_p0 = scmp.ne.s32.totalorder %s1407_s1, %s1144_s28  ;;  %s32_s25 = int_to_ptr.vmem [resolvable:$true] %s31_s25 }
   0x5   :  { %p1148_p1 = scmp.lt.u32.totalorder %s1144_s28, %s1407_s1 }
   0x7   :  { %p1150_p2 = pnand %p1148_p1, %p1145_p0 }
   0x9   :  { %1153 = shalt.err (!%p1150_p2)
}
   0xa   :  { %s1154_s10 = scalar_lea.vmem %s32_s25, 16384  ;;  %p1159_p4 = scmp.lt.s32.totalorder %s32_s25, %s32_s25 }
   0xb   :  { %p1155_p3 = scmp.ne.s32.totalorder %s32_s25, %s1154_s10  ;;  %p1160_p5 = scmp.lt.s32.totalorder %s1154_s10, %s1154_s10 }
   0xd   :  { %p1161_p6 = por %p1160_p5, %p1159_p4 }
   0xf   :  { %p1162_p7 = pnand %p1161_p6, %p1155_p3 }
  0x11   :  { %1165 = shalt.err (!%p1162_p7)
}
  0x12   :  { %s1263_s11 = smov 128   ;;  %s1264_s12 = smov 8  }
  0x13   :  { %37 = dma.hbm_to_vmem [thread:$0]  %s1407_s1, 16384, %s32_s25, [#allocation6], %s1263_s11, %s1263_s11, %s1264_s12  }
  0x14   :  { %s1265_s15 = smov [#allocation2]   ;;  %s1266_s17 = smov [#allocation7]  }
  0x15   :  { %s22_s16 = sshll.u32 %s1265_s15, 4  ;;  %s45_s18 = sshll.u32 %s1266_s17, 4  ;;  %s23_s16 = int_to_ptr.vmem [resolvable:$true] %s22_s16  ;;  %s46_s18 = int_to_ptr.vmem [resolvable:$true] %s45_s18 }
  0x16   :  { %s1166_s21 = scalar_lea.hbm %s1406_s0, 1024 }
  0x17   :  { %p1167_p8 = scmp.ne.s32.totalorder %s1406_s0, %s1166_s21  ;;  %p1170_p9 = scmp.lt.u32.totalorder %s1166_s21, %s1406_s0 }
  0x19   :  { %p1172_p10 = pnand %p1170_p9, %p1167_p8 }
  0x1b   :  { %1175 = shalt.err (!%p1172_p10)
}
  0x1c   :  { %s1176_s1 = scalar_lea.vmem %s23_s16, 1024  ;;  %p1181_p12 = scmp.lt.s32.totalorder %s23_s16, %s23_s16 }
  0x1d   :  { %p1177_p11 = scmp.ne.s32.totalorder %s23_s16, %s1176_s1  ;;  %p1182_p13 = scmp.lt.s32.totalorder %s1176_s1, %s1176_s1 }
  0x1f   :  { %p1183_p0 = por %p1182_p13, %p1181_p12 }
  0x21   :  { %p1184_p1 = pnand %p1183_p0, %p1177_p11 }
  0x23   :  { %1187 = shalt.err (!%p1184_p1)
}
  0x24   :  { %25 = dma.hbm_to_vmem [thread:$0]  %s1406_s0, 1024, %s23_s16, [#allocation3]  }
  0x25   :  { %s1188_s30 = scalar_lea.hbm %s1409_s3, 2048 }
  0x26   :  { %p1189_p2 = scmp.ne.s32.totalorder %s1409_s3, %s1188_s30  ;;  %p1192_p3 = scmp.lt.u32.totalorder %s1188_s30, %s1409_s3 }
  0x28   :  { %p1194_p4 = pnand %p1192_p3, %p1189_p2 }
  0x2a   :  { %1197 = shalt.err (!%p1194_p4)
}
  0x2b   :  { %s1198_s14 = scalar_lea.vmem %s46_s18, 2048  ;;  %p1203_p6 = scmp.lt.s32.totalorder %s46_s18, %s46_s18 }
  0x2c   :  { %p1199_p5 = scmp.ne.s32.totalorder %s46_s18, %s1198_s14  ;;  %p1204_p7 = scmp.lt.s32.totalorder %s1198_s14, %s1198_s14 }
  0x2e   :  { %p1205_p8 = por %p1204_p7, %p1203_p6 }
  0x30   :  { %p1206_p9 = pnand %p1205_p8, %p1199_p5 }
  0x32   :  { %1209 = shalt.err (!%p1206_p9)
}
  0x33   :  { %51 = dma.hbm_to_vmem [thread:$0]  %s1409_s3, 2048, %s46_s18, [#allocation6], %s1263_s11, %s1263_s11, %s1264_s12  }
  0x34   :  { %s1267_s16 = smov [#allocation8]   ;;  %s1210_s21 = scalar_lea.hbm %s1411_s5, 2048 }
  0x35   :  { %s59_s17 = sshll.u32 %s1267_s16, 4  ;;  %p1211_p10 = scmp.ne.s32.totalorder %s1411_s5, %s1210_s21  ;;  %s60_s17 = int_to_ptr.vmem [resolvable:$true] %s59_s17 }
  0x36   :  { %p1214_p11 = scmp.lt.u32.totalorder %s1210_s21, %s1411_s5 }
  0x38   :  { %p1216_p12 = pnand %p1214_p11, %p1211_p10 }
  0x3a   :  { %1219 = shalt.err (!%p1216_p12)
}
  0x3b   :  { %s1220_s1 = scalar_lea.vmem %s60_s17, 2048  ;;  %p1225_p0 = scmp.lt.s32.totalorder %s60_s17, %s60_s17 }
  0x3c   :  { %p1221_p13 = scmp.ne.s32.totalorder %s60_s17, %s1220_s1  ;;  %p1226_p1 = scmp.lt.s32.totalorder %s1220_s1, %s1220_s1 }
  0x3e   :  { %p1227_p2 = por %p1226_p1, %p1225_p0 }
  0x40   :  { %p1228_p3 = pnand %p1227_p2, %p1221_p13 }
  0x42   :  { %1231 = shalt.err (!%p1228_p3)
}
  0x43   :  { %65 = dma.hbm_to_vmem [thread:$0]  %s1411_s5, 2048, %s60_s17, [#allocation9], %s1263_s11, %s1263_s11, %s1264_s12  }
  0x44   :  { %1254 = dma.done.wait [#allocation3], 1024  }
  0x45   :  { %1255 = vsyncadd [#allocation3], 4294966272 }
  0x46   :  { %1256 = dma.done.wait [#allocation6], 18432  }
  0x47   :  { %1257 = vsyncadd [#allocation6], 4294948864 }
  0x48   :  { %1258 = dma.done.wait [#allocation9], 2048  }
  0x49   :  { %1259 = vsyncadd [#allocation9], 4294965248  ;;  %v104_v0 = vld [vmem:[#allocation5 + $0x80] sm:$0xff]  ;;  %v105_v1 = vld [vmem:[#allocation5 + $0x88] sm:$0xff]  ;;  %vm1269_vm0 = vmmov 0   ;;  %s1271_s28 = smov [#allocation10]  }
  0x4a   :  { %v88_v2 = vld [vmem:[#allocation5] sm:$0xff]  ;;  %v958_v3 = vpack.c.bf16 %v105_v1, %v104_v0  ;;  %v89_v4 = vld [vmem:[#allocation5 + $0x8] sm:$0xff]  ;;  %v106_v11 = vld [vmem:[#allocation5 + $0x90] sm:$0xff]  ;;  %s700_s29 = sshll.u32 %s1271_s28, 4  ;;  %s701_s29 = int_to_ptr.vmem [resolvable:$true] %s700_s29 }
  0x4b   :  { %v136_v5 = vld [vmem:[#allocation5 + $0x180] sm:$0xff]  ;;  %v137_v6 = vld [vmem:[#allocation5 + $0x188] sm:$0xff]  ;;  %v960_v7 = vpack.c.bf16 %v89_v4, %v88_v2  ;;  %v107_v13 = vld [vmem:[#allocation5 + $0x98] sm:$0xff]  ;;  %s1232_s30 = scalar_lea.vmem %s701_s29, 128  ;;  %p1237_p5 = scmp.lt.s32.totalorder %s701_s29, %s701_s29 }
  0x4c   :  { %v990_v8 = vpack.c.bf16 %v137_v6, %v136_v5  ;;  %v120_v9 = vld [vmem:[#allocation5 + $0x100] sm:$0xff]  ;;  %v121_v10 = vld [vmem:[#allocation5 + $0x108] sm:$0xff]  ;;  %959 = vmatprep.subr.bf16.mxu0 %v958_v3  ;;  %v90_v14 = vld [vmem:[#allocation5 + $0x10] sm:$0xff]  ;;  %v962_v16 = vpack.c.bf16 %v107_v13, %v106_v11  ;;  %p1233_p4 = scmp.ne.s32.totalorder %s701_s29, %s1232_s30  ;;  %p1238_p6 = scmp.lt.s32.totalorder %s1232_s30, %s1232_s30 }
  0x4d   :  { %v992_v12 = vpack.c.bf16 %v121_v10, %v120_v9  ;;  %v91_v15 = vld [vmem:[#allocation5 + $0x18] sm:$0xff]  ;;  %961 = vmatpush3.bf16.msra.mxu0 %v960_v7  ;;  %v138_v18 = vld [vmem:[#allocation5 + $0x190] sm:$0xff]  ;;  %v108_v23 = vld [vmem:[#allocation5 + $0xa0] sm:$0xff] }
  0x4e   :  { %991 = vmatprep.subr.bf16.mxu1 %v990_v8  ;;  %v964_v17 = vpack.c.bf16 %v91_v15, %v90_v14  ;;  %v139_v19 = vld [vmem:[#allocation5 + $0x198] sm:$0xff]  ;;  %v122_v20 = vld [vmem:[#allocation5 + $0x110] sm:$0xff]  ;;  %v109_v24 = vld [vmem:[#allocation5 + $0xa8] sm:$0xff]  ;;  %963 = vmatprep.subr.bf16.mxu0 %v962_v16  ;;  %p1239_p7 = por %p1238_p6, %p1237_p5 }
  0x4f   :  { %993 = vmatpush3.bf16.msra.mxu1 %v992_v12  ;;  %v994_v21 = vpack.c.bf16 %v139_v19, %v138_v18  ;;  %v123_v22 = vld [vmem:[#allocation5 + $0x118] sm:$0xff]  ;;  %v966_v26 = vpack.c.bf16 %v109_v24, %v108_v23  ;;  %v92_v27 = vld [vmem:[#allocation5 + $0x20] sm:$0xff]  ;;  %v93_v28 = vld [vmem:[#allocation5 + $0x28] sm:$0xff] }
  0x50   :  { %v996_v25 = vpack.c.bf16 %v123_v22, %v122_v20  ;;  %v140_v29 = vld [vmem:[#allocation5 + $0x1a0] sm:$0xff]  ;;  %v141_v30 = vld [vmem:[#allocation5 + $0x1a8] sm:$0xff]  ;;  %v968_v33 = vpack.c.bf16 %v93_v28, %v92_v27  ;;  %v110_v35 = vld [vmem:[#allocation5 + $0xb0] sm:$0xff]  ;;  %p1240_p8 = pnand %p1239_p7, %p1233_p4 }
  0x51   :  { %995 = vmatprep.subr.bf16.mxu1 %v994_v21  ;;  %v124_v31 = vld [vmem:[#allocation5 + $0x120] sm:$0xff]  ;;  %v125_v32 = vld [vmem:[#allocation5 + $0x128] sm:$0xff]  ;;  %965 = vmatpush3.bf16.msra.mxu0 %v964_v17  ;;  %v998_v34 = vpack.c.bf16 %v141_v30, %v140_v29  ;;  %v111_v36 = vld [vmem:[#allocation5 + $0xb8] sm:$0xff] }
  0x52   :  { %v94_v37 = vld [vmem:[#allocation5 + $0x30] sm:$0xff]  ;;  %967 = vmatprep.subr.bf16.mxu0 %v966_v26  ;;  %v1000_v38 = vpack.c.bf16 %v125_v32, %v124_v31  ;;  %v970_v39 = vpack.c.bf16 %v111_v36, %v110_v35  ;;  %v95_v40 = vld [vmem:[#allocation5 + $0x38] sm:$0xff]  ;;  %v112_v46 = vld [vmem:[#allocation5 + $0xc0] sm:$0xff] }
  0x53   :  { %997 = vmatpush3.bf16.msra.mxu1 %v996_v25  ;;  %v142_v41 = vld [vmem:[#allocation5 + $0x1b0] sm:$0xff]  ;;  %v143_v42 = vld [vmem:[#allocation5 + $0x1b8] sm:$0xff]  ;;  %v113_v47 = vld [vmem:[#allocation5 + $0xc8] sm:$0xff]  ;;  %v972_v48 = vpack.c.bf16 %v95_v40, %v94_v37 }
  0x54   :  { %999 = vmatprep.subr.bf16.mxu1 %v998_v34  ;;  %v1002_v43 = vpack.c.bf16 %v143_v42, %v142_v41  ;;  %v126_v44 = vld [vmem:[#allocation5 + $0x130] sm:$0xff]  ;;  %v127_v45 = vld [vmem:[#allocation5 + $0x138] sm:$0xff]  ;;  %v144_v49 = vld [vmem:[#allocation5 + $0x1c0] sm:$0xff]  ;;  %v974_v52 = vpack.c.bf16 %v113_v47, %v112_v46 }
  0x55   :  { %969 = vmatpush3.bf16.msra.mxu0 %v968_v33  ;;  %v145_v50 = vld [vmem:[#allocation5 + $0x1c8] sm:$0xff]  ;;  %v1004_v51 = vpack.c.bf16 %v127_v45, %v126_v44  ;;  %v96_v53 = vld [vmem:[#allocation5 + $0x40] sm:$0xff]  ;;  %v114_v58 = vld [vmem:[#allocation5 + $0xd0] sm:$0xff] }
  0x56   :  { %971 = vmatprep.subr.bf16.mxu0 %v970_v39  ;;  %v97_v54 = vld [vmem:[#allocation5 + $0x48] sm:$0xff]  ;;  %v128_v55 = vld [vmem:[#allocation5 + $0x140] sm:$0xff]  ;;  %v1006_v56 = vpack.c.bf16 %v145_v50, %v144_v49  ;;  %v115_v59 = vld [vmem:[#allocation5 + $0xd8] sm:$0xff] }
  0x57   :  { %1001 = vmatpush3.bf16.msra.mxu1 %v1000_v38  ;;  %v129_v57 = vld [vmem:[#allocation5 + $0x148] sm:$0xff]  ;;  %v146_v60 = vld [vmem:[#allocation5 + $0x1d0] sm:$0xff]  ;;  %v147_v61 = vld [vmem:[#allocation5 + $0x1d8] sm:$0xff]  ;;  %v976_v62 = vpack.c.bf16 %v97_v54, %v96_v53  ;;  %v978_v0 = vpack.c.bf16 %v115_v59, %v114_v58 }
  0x58   :  { %1003 = vmatprep.subr.bf16.mxu1 %v1002_v43  ;;  %v1008_v63 = vpack.c.bf16 %v129_v57, %v128_v55  ;;  %v98_v1 = vld [vmem:[#allocation5 + $0x50] sm:$0xff]  ;;  %v99_v2 = vld [vmem:[#allocation5 + $0x58] sm:$0xff]  ;;  %v1010_v4 = vpack.c.bf16 %v147_v61, %v146_v60  ;;  %v116_v6 = vld [vmem:[#allocation5 + $0xe0] sm:$0xff] }
  0x59   :  { %973 = vmatpush3.bf16.msra.mxu0 %v972_v48  ;;  %v130_v3 = vld [vmem:[#allocation5 + $0x150] sm:$0xff]  ;;  %v131_v5 = vld [vmem:[#allocation5 + $0x158] sm:$0xff]  ;;  %v117_v7 = vld [vmem:[#allocation5 + $0xe8] sm:$0xff]  ;;  %v980_v10 = vpack.c.bf16 %v99_v2, %v98_v1 }
  0x5a   :  { %975 = vmatprep.subr.bf16.mxu0 %v974_v52  ;;  %v148_v8 = vld [vmem:[#allocation5 + $0x1e0] sm:$0xff]  ;;  %v149_v9 = vld [vmem:[#allocation5 + $0x1e8] sm:$0xff]  ;;  %v1012_v13 = vpack.c.bf16 %v131_v5, %v130_v3  ;;  %v982_v14 = vpack.c.bf16 %v117_v7, %v116_v6  ;;  %v118_v19 = vld [vmem:[#allocation5 + $0xf0] sm:$0xff] }
  0x5b   :  { %1005 = vmatpush3.bf16.msra.mxu1 %v1004_v51  ;;  %v100_v11 = vld [vmem:[#allocation5 + $0x60] sm:$0xff]  ;;  %v101_v12 = vld [vmem:[#allocation5 + $0x68] sm:$0xff]  ;;  %v1014_v18 = vpack.c.bf16 %v149_v9, %v148_v8  ;;  %v119_v20 = vld [vmem:[#allocation5 + $0xf8] sm:$0xff] }
  0x5c   :  { %1007 = vmatprep.subr.bf16.mxu1 %v1006_v56  ;;  %v132_v15 = vld [vmem:[#allocation5 + $0x160] sm:$0xff]  ;;  %v133_v16 = vld [vmem:[#allocation5 + $0x168] sm:$0xff]  ;;  %v83_v21 = vld [vmem:[#allocation2 + $0x18] sm:$0xff]  ;;  %v984_v24 = vpack.c.bf16 %v101_v12, %v100_v11  ;;  %v986_v26 = vpack.c.bf16 %v119_v20, %v118_v19 }
  0x5d   :  { %977 = vmatpush3.bf16.msra.mxu0 %v976_v62  ;;  %v81_v17 = vld [vmem:[#allocation2 + $0x8] sm:$0xff]  ;;  %v150_v22 = vld [vmem:[#allocation5 + $0x1f0] sm:$0xff]  ;;  %v151_v23 = vld [vmem:[#allocation5 + $0x1f8] sm:$0xff]  ;;  %357 = vmatprep.mubr.f32.mxu1 %v83_v21  ;;  %v1016_v25 = vpack.c.bf16 %v133_v16, %v132_v15 }
  0x5e   :  { %979 = vmatprep.subr.bf16.mxu0 %v978_v0  ;;  %287 = vmatprep.mubr.f32.mxu0 %v81_v17  ;;  %v102_v27 = vld [vmem:[#allocation5 + $0x70] sm:$0xff]  ;;  %v103_v28 = vld [vmem:[#allocation5 + $0x78] sm:$0xff]  ;;  %v1018_v30 = vpack.c.bf16 %v151_v23, %v150_v22  ;;  %v168_v32 = vld [vmem:[#allocation5 + $0x280] sm:$0xff] }
  0x5f   :  { %1009 = vmatpush3.bf16.msra.mxu1 %v1008_v63  ;;  %v134_v29 = vld [vmem:[#allocation5 + $0x170] sm:$0xff]  ;;  %v135_v31 = vld [vmem:[#allocation5 + $0x178] sm:$0xff]  ;;  %v169_v33 = vld [vmem:[#allocation5 + $0x288] sm:$0xff]  ;;  %v988_v36 = vpack.c.bf16 %v103_v28, %v102_v27 }
  0x60   :  { %1011 = vmatprep.subr.bf16.mxu1 %v1010_v4  ;;  %v200_v34 = vld [vmem:[#allocation5 + $0x380] sm:$0xff]  ;;  %v201_v35 = vld [vmem:[#allocation5 + $0x388] sm:$0xff]  ;;  %v1020_v37 = vpack.c.bf16 %v135_v31, %v134_v29  ;;  %v1022_v38 = vpack.c.bf16 %v169_v33, %v168_v32  ;;  %v170_v44 = vld [vmem:[#allocation5 + $0x290] sm:$0xff] }
  0x61   :  { %981 = vmatpush3.bf16.msra.mxu0 %v980_v10  ;;  %v152_v39 = vld [vmem:[#allocation5 + $0x200] sm:$0xff]  ;;  %v153_v40 = vld [vmem:[#allocation5 + $0x208] sm:$0xff]  ;;  %v1054_v42 = vpack.c.bf16 %v201_v35, %v200_v34  ;;  %v171_v45 = vld [vmem:[#allocation5 + $0x298] sm:$0xff] }
  0x62   :  { %983 = vmatprep.subr.bf16.mxu0 %v982_v14  ;;  %v184_v41 = vld [vmem:[#allocation5 + $0x300] sm:$0xff]  ;;  %v185_v43 = vld [vmem:[#allocation5 + $0x308] sm:$0xff]  ;;  %v202_v46 = vld [vmem:[#allocation5 + $0x390] sm:$0xff]  ;;  %v1024_v49 = vpack.c.bf16 %v153_v40, %v152_v39  ;;  %v1026_v52 = vpack.c.bf16 %v171_v45, %v170_v44 }
  0x63   :  { %1013 = vmatpush3.bf16.msra.mxu1 %v1012_v13  ;;  %v203_v47 = vld [vmem:[#allocation5 + $0x398] sm:$0xff]  ;;  %v80_v48 = vld [vmem:[#allocation2] sm:$0xff]  ;;  %v82_v50 = vld [vmem:[#allocation2 + $0x10] sm:$0xff]  ;;  %v1056_v51 = vpack.c.bf16 %v185_v43, %v184_v41 }
  0x64   :  { %1015 = vmatprep.subr.bf16.mxu1 %v1014_v18  ;;  %v154_v53 = vld [vmem:[#allocation5 + $0x210] sm:$0xff]  ;;  %v155_v54 = vld [vmem:[#allocation5 + $0x218] sm:$0xff]  ;;  %v1058_v56 = vpack.c.bf16 %v203_v47, %v202_v46  ;;  %v172_v58 = vld [vmem:[#allocation5 + $0x2a0] sm:$0xff] }
  0x65   :  { %985 = vmatpush3.bf16.msra.mxu0 %v984_v24  ;;  %v186_v55 = vld [vmem:[#allocation5 + $0x310] sm:$0xff]  ;;  %v187_v57 = vld [vmem:[#allocation5 + $0x318] sm:$0xff]  ;;  %v173_v59 = vld [vmem:[#allocation5 + $0x2a8] sm:$0xff]  ;;  %v1028_v62 = vpack.c.bf16 %v155_v54, %v154_v53 }
  0x66   :  { %987 = vmatprep.subr.bf16.mxu0 %v986_v26  ;;  %v204_v60 = vld [vmem:[#allocation5 + $0x3a0] sm:$0xff]  ;;  %v205_v61 = vld [vmem:[#allocation5 + $0x3a8] sm:$0xff]  ;;  %v1060_v63 = vpack.c.bf16 %v187_v57, %v186_v55  ;;  %v1030_v0 = vpack.c.bf16 %v173_v59, %v172_v58  ;;  %v174_v6 = vld [vmem:[#allocation5 + $0x2b0] sm:$0xff] }
  0x67   :  { %1017 = vmatpush3.bf16.msra.mxu1 %v1016_v25  ;;  %v156_v1 = vld [vmem:[#allocation5 + $0x220] sm:$0xff]  ;;  %v157_v2 = vld [vmem:[#allocation5 + $0x228] sm:$0xff]  ;;  %v1062_v4 = vpack.c.bf16 %v205_v61, %v204_v60  ;;  %v175_v7 = vld [vmem:[#allocation5 + $0x2b8] sm:$0xff] }
  0x68   :  { %1019 = vmatprep.subr.bf16.mxu1 %v1018_v30  ;;  %v188_v3 = vld [vmem:[#allocation5 + $0x320] sm:$0xff]  ;;  %v189_v5 = vld [vmem:[#allocation5 + $0x328] sm:$0xff]  ;;  %v206_v8 = vld [vmem:[#allocation5 + $0x3b0] sm:$0xff]  ;;  %v1032_v10 = vpack.c.bf16 %v157_v2, %v156_v1  ;;  %v1034_v12 = vpack.c.bf16 %v175_v7, %v174_v6 }
  0x69   :  { %989 = vmatpush3.bf16.msra.mxu0 %v988_v36  ;;  %v207_v9 = vld [vmem:[#allocation5 + $0x3b8] sm:$0xff]  ;;  %v1064_v11 = vpack.c.bf16 %v189_v5, %v188_v3  ;;  %v158_v13 = vld [vmem:[#allocation5 + $0x230] sm:$0xff]  ;;  %v176_v18 = vld [vmem:[#allocation5 + $0x2c0] sm:$0xff] }
  0x6a   :  { %1023 = vmatprep.subr.bf16.mxu0 %v1022_v38  ;;  %v159_v14 = vld [vmem:[#allocation5 + $0x238] sm:$0xff]  ;;  %v190_v15 = vld [vmem:[#allocation5 + $0x330] sm:$0xff]  ;;  %v1066_v16 = vpack.c.bf16 %v207_v9, %v206_v8  ;;  %v177_v19 = vld [vmem:[#allocation5 + $0x2c8] sm:$0xff] }
  0x6b   :  { %1021 = vmatpush3.bf16.msra.mxu1 %v1020_v37  ;;  %v191_v17 = vld [vmem:[#allocation5 + $0x338] sm:$0xff]  ;;  %v208_v20 = vld [vmem:[#allocation5 + $0x3c0] sm:$0xff]  ;;  %v209_v21 = vld [vmem:[#allocation5 + $0x3c8] sm:$0xff]  ;;  %v1036_v22 = vpack.c.bf16 %v159_v14, %v158_v13  ;;  %v1038_v26 = vpack.c.bf16 %v177_v19, %v176_v18 }
  0x6c   :  { %1055 = vmatprep.subr.bf16.mxu1 %v1054_v42  ;;  %288 = vmatmul.mubr.f32.vlgmr.msra.gmra.mrb[0].mxu0 %v80_v48  ;;  %v85_v23 = vld [vmem:[#allocation2 + $0x28] sm:$0xff]  ;;  %v87_v24 = vld [vmem:[#allocation2 + $0x38] sm:$0xff]  ;;  %v1068_v25 = vpack.c.bf16 %v191_v17, %v190_v15  ;;  %v160_v27 = vld [vmem:[#allocation5 + $0x240] sm:$0xff]  ;;  %v1070_v30 = vpack.c.bf16 %v209_v21, %v208_v20 }
  0x6d   :  { %1025 = vmatpush3.bf16.msra.mxu0 %v1024_v49  ;;  %v161_v28 = vld [vmem:[#allocation5 + $0x248] sm:$0xff]  ;;  %v192_v29 = vld [vmem:[#allocation5 + $0x340] sm:$0xff]  ;;  %v178_v32 = vld [vmem:[#allocation5 + $0x2d0] sm:$0xff]  ;;  %427 = vmatprep.mubr.f32.mxu0 %v85_v23 }
  0x6e   :  { %358 = vmatmul.mubr.f32.vlgmr.msra.gmra.mrb[0].mxu1 %v82_v50  ;;  %1027 = vmatprep.subr.bf16.mxu0 %v1026_v52  ;;  %v193_v31 = vld [vmem:[#allocation5 + $0x348] sm:$0xff]  ;;  %v179_v33 = vld [vmem:[#allocation5 + $0x2d8] sm:$0xff]  ;;  %v210_v34 = vld [vmem:[#allocation5 + $0x3d0] sm:$0xff]  ;;  %v1040_v36 = vpack.c.bf16 %v161_v28, %v160_v27 }
  0x6f   :  { %1057 = vmatpush3.bf16.msra.mxu1 %v1056_v51  ;;  %v211_v35 = vld [vmem:[#allocation5 + $0x3d8] sm:$0xff]  ;;  %497 = vmatprep.mubr.f32.mxu1 %v87_v24  ;;  %v1072_v37 = vpack.c.bf16 %v193_v31, %v192_v29  ;;  %v1042_v38 = vpack.c.bf16 %v179_v33, %v178_v32  ;;  %v162_v39 = vld [vmem:[#allocation5 + $0x250] sm:$0xff]  ;;  %v180_v44 = vld [vmem:[#allocation5 + $0x2e0] sm:$0xff]  ;;  %v1270_v33 = vmov 0.0  }
  0x70   :  { %1059 = vmatprep.subr.bf16.mxu1 %v1058_v56  ;;  %v163_v40 = vld [vmem:[#allocation5 + $0x258] sm:$0xff]  ;;  %v194_v41 = vld [vmem:[#allocation5 + $0x350] sm:$0xff]  ;;  %v1074_v42 = vpack.c.bf16 %v211_v35, %v210_v34  ;;  %v181_v45 = vld [vmem:[#allocation5 + $0x2e8] sm:$0xff] }
  0x71   :  { %1029 = vmatpush3.bf16.msra.mxu0 %v1028_v62  ;;  %v195_v43 = vld [vmem:[#allocation5 + $0x358] sm:$0xff]  ;;  %v212_v46 = vld [vmem:[#allocation5 + $0x3e0] sm:$0xff]  ;;  %v213_v47 = vld [vmem:[#allocation5 + $0x3e8] sm:$0xff]  ;;  %v1044_v48 = vpack.c.bf16 %v163_v40, %v162_v39  ;;  %v1046_v50 = vpack.c.bf16 %v181_v45, %v180_v44 }
  0x72   :  { %1031 = vmatprep.subr.bf16.mxu0 %v1030_v0  ;;  %v1076_v49 = vpack.c.bf16 %v195_v43, %v194_v41  ;;  %v164_v51 = vld [vmem:[#allocation5 + $0x260] sm:$0xff]  ;;  %v165_v52 = vld [vmem:[#allocation5 + $0x268] sm:$0xff]  ;;  %v1078_v54 = vpack.c.bf16 %v213_v47, %v212_v46  ;;  %v182_v56 = vld [vmem:[#allocation5 + $0x2f0] sm:$0xff] }
  0x73   :  { %1061 = vmatpush3.bf16.msra.mxu1 %v1060_v63  ;;  %v196_v53 = vld [vmem:[#allocation5 + $0x360] sm:$0xff]  ;;  %v197_v55 = vld [vmem:[#allocation5 + $0x368] sm:$0xff]  ;;  %v183_v57 = vld [vmem:[#allocation5 + $0x2f8] sm:$0xff]  ;;  %v1048_v60 = vpack.c.bf16 %v165_v52, %v164_v51 }
  0x74   :  { %1063 = vmatprep.subr.bf16.mxu1 %v1062_v4  ;;  %v214_v58 = vld [vmem:[#allocation5 + $0x3f0] sm:$0xff]  ;;  %v215_v59 = vld [vmem:[#allocation5 + $0x3f8] sm:$0xff]  ;;  %v1080_v61 = vpack.c.bf16 %v197_v55, %v196_v53  ;;  %v1050_v62 = vpack.c.bf16 %v183_v57, %v182_v56  ;;  %v84_v6 = vld [vmem:[#allocation2 + $0x20] sm:$0xff] }
  0x75   :  { %1033 = vmatpush3.bf16.msra.mxu0 %v1032_v10  ;;  %v166_v63 = vld [vmem:[#allocation5 + $0x270] sm:$0xff]  ;;  %v167_v0 = vld [vmem:[#allocation5 + $0x278] sm:$0xff]  ;;  %v1082_v1 = vpack.c.bf16 %v215_v59, %v214_v58  ;;  %v505_v8 = vld [vmem:[#allocation7] sm:$0xff] }
  0x76   :  { %1035 = vmatprep.subr.bf16.mxu0 %v1034_v12  ;;  %v198_v2 = vld [vmem:[#allocation5 + $0x370] sm:$0xff]  ;;  %v199_v3 = vld [vmem:[#allocation5 + $0x378] sm:$0xff]  ;;  %v1052_v4 = vpack.c.bf16 %v167_v0, %v166_v63  ;;  %v506_v9 = vld [vmem:[#allocation7 + $0x8] sm:$0xff] }
  0x77   :  { %1065 = vmatpush3.bf16.msra.mxu1 %v1064_v11  ;;  %v1084_v5 = vpack.c.bf16 %v199_v3, %v198_v2  ;;  %v86_v7 = vld [vmem:[#allocation2 + $0x30] sm:$0xff]  ;;  %v1268_v11 = vmov 0.0|0.0   ;;  %v1087_v12 = vpack.c.bf16 %v506_v9, %v505_v8  ;;  %v508_v13 = vld [vmem:[#allocation7 + $0x18] sm:$0xff]  ;;  %v509_v15 = vld [vmem:[#allocation7 + $0x20] sm:$0xff] }
  0x78   :  { %1067 = vmatprep.subr.bf16.mxu1 %v1066_v16  ;;  %v507_v10 = vld [vmem:[#allocation7 + $0x10] sm:$0xff]  ;;  %v510_v16 = vld [vmem:[#allocation7 + $0x28] sm:$0xff]  ;;  %v512_v19 = vld [vmem:[#allocation7 + $0x38] sm:$0xff] }
  0x79   :  { %1037 = vmatpush3.bf16.msra.mxu0 %v1036_v22  ;;  %v1090_v14 = vpack.c.bf16 %v508_v13, %v507_v10  ;;  %v1093_v17 = vpack.c.bf16 %v510_v16, %v509_v15  ;;  %v511_v18 = vld [vmem:[#allocation7 + $0x30] sm:$0xff]  ;;  %v513_v21 = vld [vmem:[#allocation7 + $0x40] sm:$0xff]  ;;  %v514_v22 = vld [vmem:[#allocation7 + $0x48] sm:$0xff] }
  0x7a   :  { %1039 = vmatprep.subr.bf16.mxu0 %v1038_v26  ;;  %v1096_v20 = vpack.c.bf16 %v512_v19, %v511_v18  ;;  %v1099_v23 = vpack.c.bf16 %v514_v22, %v513_v21  ;;  %v515_v24 = vld [vmem:[#allocation7 + $0x50] sm:$0xff]  ;;  %v517_v27 = vld [vmem:[#allocation7 + $0x60] sm:$0xff]  ;;  %v518_v28 = vld [vmem:[#allocation7 + $0x68] sm:$0xff] }
  0x7b   :  { %1069 = vmatpush3.bf16.msra.mxu1 %v1068_v25  ;;  %v516_v25 = vld [vmem:[#allocation7 + $0x58] sm:$0xff]  ;;  %v1105_v29 = vpack.c.bf16 %v518_v28, %v517_v27  ;;  %v600_v34 = vld [vmem:[#allocation8] sm:$0xff]  ;;  %v601_v35 = vld [vmem:[#allocation8 + $0x8] sm:$0xff] }
  0x7c   :  { %1071 = vmatprep.subr.bf16.mxu1 %v1070_v30  ;;  %v1102_v26 = vpack.c.bf16 %v516_v25, %v515_v24  ;;  %v519_v30 = vld [vmem:[#allocation7 + $0x70] sm:$0xff]  ;;  %v520_v31 = vld [vmem:[#allocation7 + $0x78] sm:$0xff]  ;;  %v604_v40 = vld [vmem:[#allocation8 + $0x20] sm:$0xff] }
  0x7d   :  { %1041 = vmatpush3.bf16.msra.mxu0 %v1040_v36  ;;  %v1108_v32 = vpack.c.bf16 %v520_v31, %v519_v30  ;;  %v602_v36 = vld [vmem:[#allocation8 + $0x10] sm:$0xff]  ;;  %v605_v41 = vld [vmem:[#allocation8 + $0x28] sm:$0xff]  ;;  %v607_v44 = vld [vmem:[#allocation8 + $0x38] sm:$0xff] }
  0x7e   :  { %1043 = vmatprep.subr.bf16.mxu0 %v1042_v38  ;;  %v603_v38 = vld [vmem:[#allocation8 + $0x18] sm:$0xff]  ;;  %v606_v43 = vld [vmem:[#allocation8 + $0x30] sm:$0xff]  ;;  %v608_v46 = vld [vmem:[#allocation8 + $0x40] sm:$0xff] }
  0x7f   :  { %1073 = vmatpush3.bf16.msra.mxu1 %v1072_v37  ;;  %v1111_v37 = vpack.c.bf16 %v601_v35, %v600_v34  ;;  %v1114_v39 = vpack.c.bf16 %v603_v38, %v602_v36  ;;  %v1120_v45 = vpack.c.bf16 %v607_v44, %v606_v43  ;;  %v609_v47 = vld [vmem:[#allocation8 + $0x48] sm:$0xff]  ;;  %v711_v53 = vld [vmem:[%s1408_s2] ss:$0 sm:$0xff]  ;;  %v614_v10 = vld [vmem:[#allocation8 + $0x70] sm:$0xff] }
  0x80   :  { %1075 = vmatprep.subr.bf16.mxu1 %v1074_v42  ;;  %v1117_v42 = vpack.c.bf16 %v605_v41, %v604_v40  ;;  %v613_v8 = vld [vmem:[#allocation8 + $0x68] sm:$0xff] }
  0x81   :  { %1045 = vmatpush3.bf16.msra.mxu0 %v1044_v48  ;;  %v1123_v48 = vpack.c.bf16 %v609_v47, %v608_v46 }
  0x82   :  { %1047 = vmatprep.subr.bf16.mxu0 %v1046_v50  ;;  %v611_v50 = vld [vmem:[#allocation8 + $0x58] sm:$0xff] }
  0x83   :  { %1077 = vmatpush3.bf16.msra.mxu1 %v1076_v49  ;;  %v610_v49 = vld [vmem:[#allocation8 + $0x50] sm:$0xff] }
  0x84   :  { %1079 = vmatprep.subr.bf16.mxu1 %v1078_v54  ;;  %v1126_v51 = vpack.c.bf16 %v611_v50, %v610_v49 }
  0x85   :  { %1049 = vmatpush3.bf16.msra.mxu0 %v1048_v60 }
  0x86   :  { %1051 = vmatprep.subr.bf16.mxu0 %v1050_v62 }
  0x87   :  { %1081 = vmatpush3.bf16.msra.mxu1 %v1080_v61 }
  0x88   :  { %1083 = vmatprep.subr.bf16.mxu1 %v1082_v1 }
  0x89   :  { %1053 = vmatpush3.bf16.msra.mxu0 %v1052_v4 }
  0x8a   :  { %1086 = vmatprep.subr.bf16.mxu0 %v1268_v11 }
  0x8b   :  { %1085 = vmatpush3.bf16.msra.mxu1 %v1084_v5 }
  0x8c   :  { %428 = vmatmul.mubr.f32.vlgmr.msra.gmra.mrb[2].mxu0 %v84_v6  ;;  %1110 = vmatprep.subr.bf16.mxu1 %v1268_v11 }
  0x8d   :  { %1088 = vmatpush3.bf16.msra.mxu0 %v1087_v12  ;;  %920 = vmatprep.mubr.msk.f32.mxu0 %vm1269_vm0, %v1270_v33  ;;  %v615_v12 = vld [vmem:[#allocation8 + $0x78] sm:$0xff] }
  0x8e   :  { %498 = vmatmul.mubr.f32.vlgmr.msra.gmra.mrb[2].mxu1 %v86_v7  ;;  %1089 = vmatprep.subr.bf16.mxu0 %v1268_v11  ;;  %v612_v7 = vld [vmem:[#allocation8 + $0x60] sm:$0xff]  ;;  %v1132_v13 = vpack.c.bf16 %v615_v12, %v614_v10 }
  0x8f   :  { %955 = vmatprep.mubr.msk.f32.mxu1 %vm1269_vm0, %v1270_v33  ;;  %1112 = vmatpush3.bf16.msra.mxu1 %v1111_v37  ;;  %v1129_v9 = vpack.c.bf16 %v613_v8, %v612_v7 }
  0x90   :  { %1113 = vmatprep.subr.bf16.mxu1 %v1268_v11 }
  0x91   :  { %1091 = vmatpush3.bf16.msra.mxu0 %v1090_v14  ;;  %v712_v14 = vld [vmem:[%s1410_s4] ss:$0 sm:$0xff] }
  0x92   :  { %1092 = vmatprep.subr.bf16.mxu0 %v1268_v11 }
  0x93   :  { %1115 = vmatpush3.bf16.msra.mxu1 %v1114_v39 }
  0x94   :  { %1116 = vmatprep.subr.bf16.mxu1 %v1268_v11 }
  0x95   :  { %1094 = vmatpush3.bf16.msra.mxu0 %v1093_v17 }
  0x96   :  { %1095 = vmatprep.subr.bf16.mxu0 %v1268_v11 }
  0x97   :  { %1118 = vmatpush3.bf16.msra.mxu1 %v1117_v42 }
  0x98   :  { %1119 = vmatprep.subr.bf16.mxu1 %v1268_v11 }
  0x99   :  { %1097 = vmatpush3.bf16.msra.mxu0 %v1096_v20  ;;  %v713_v20 = vld [vmem:[%s1412_s6] ss:$0 sm:$0xff] }
  0x9a   :  { %1098 = vmatprep.subr.bf16.mxu0 %v1268_v11 }
  0x9b   :  { %1121 = vmatpush3.bf16.msra.mxu1 %v1120_v45 }
  0x9c   :  { %1122 = vmatprep.subr.bf16.mxu1 %v1268_v11 }
  0x9d   :  { %1100 = vmatpush3.bf16.msra.mxu0 %v1099_v23 }
  0x9e   :  { %1101 = vmatprep.subr.bf16.mxu0 %v1268_v11 }
  0x9f   :  { %1124 = vmatpush3.bf16.msra.mxu1 %v1123_v48 }
  0xa0   :  { %1125 = vmatprep.subr.bf16.mxu1 %v1268_v11 }
  0xa1   :  { %1103 = vmatpush3.bf16.msra.mxu0 %v1102_v26 }
  0xa2   :  { %1104 = vmatprep.subr.bf16.mxu0 %v1268_v11 }
  0xa3   :  { %1127 = vmatpush3.bf16.msra.mxu1 %v1126_v51 }
  0xa4   :  { %1128 = vmatprep.subr.bf16.mxu1 %v1268_v11 }
  0xa5   :  { %1106 = vmatpush3.bf16.msra.mxu0 %v1105_v29 }
  0xa6   :  { %1107 = vmatprep.subr.bf16.mxu0 %v1268_v11 }
  0xa7   :  { %1130 = vmatpush3.bf16.msra.mxu1 %v1129_v9 }
  0xa8   :  { %1131 = vmatprep.subr.bf16.mxu1 %v1268_v11 }
  0xa9   :  { %1109 = vmatpush3.bf16.msra.mxu0 %v1108_v32 }
  0xab   :  { %1133 = vmatpush3.bf16.msra.mxu1 %v1132_v13 }
 0x13f   :  { %v746_v52 = vpop.f32.mrb[0].mxu0 }
 0x140   :  { %v747_v54 = vpop.f32.mrb[1].mxu0 }
 0x141   :  { %v781_v55 = vpop.f32.mrb[0].mxu1  ;;  %v748_v56 = vadd.f32 %v747_v54, %v746_v52 }
 0x142   :  { %v782_v57 = vpop.f32.mrb[1].mxu1 }
 0x143   :  { %v783_v58 = vadd.f32 %v782_v57, %v781_v55  ;;  %v290_v59 = vadd.f32 %v748_v56, %v711_v53 }
 0x145   :  { %v360_v60 = vadd.f32 %v783_v58, %v290_v59 }
 0x15f   :  { %v816_v61 = vpop.f32.mrb[2].mxu0 }
 0x160   :  { %v817_v62 = vpop.f32.mrb[3].mxu0 }
 0x161   :  { %v851_v63 = vpop.f32.mrb[2].mxu1  ;;  %v818_v0 = vadd.f32 %v817_v62, %v816_v61 }
 0x162   :  { %v852_v1 = vpop.f32.mrb[3].mxu1 }
 0x163   :  { %v853_v2 = vadd.f32 %v852_v1, %v851_v63  ;;  %v430_v3 = vadd.f32 %v818_v0, %v360_v60 }
 0x165   :  { %v500_v4 = vadd.f32 %v853_v2, %v430_v3 }
 0x167   :  { %v503_v5 = vmul.f32 0.01, %v500_v4 }
 0x169   :  { %v504_v6 = vmax.f32 %v500_v4, %v503_v5 }
 0x16b   :  { %921 = vmatmul.mubr.f32.vlgmr.msra.gmra.mrb[4].mxu0 %v504_v6 }
 0x23e   :  { %v594_v15 = vpop.f32.mrb[4].mxu0 }
 0x23f   :  { %v595_v16 = vadd.f32 %v712_v14, %v594_v15  ;;  %v922_v17 = vpop.f32.mrb[5].mxu0 }
 0x241   :  { %v598_v18 = vmul.f32 0.01, %v595_v16 }
 0x243   :  { %v599_v19 = vmax.f32 %v595_v16, %v598_v18 }
 0x245   :  { %956 = vmatmul.mubr.f32.vlgmr.msra.gmra.mrb[4].mxu1 %v599_v19 }
 0x318   :  { %v689_v11 = vpop.f32.mrb[4].mxu1 }
 0x319   :  { %v690_v21 = vadd.f32 %v713_v20, %v689_v11  ;;  %v957_v22 = vpop.f32.mrb[5].mxu1 }
 0x31b   :  { %693 = vst [vmem:[#allocation10] sm:$0xff] %v690_v21 }
 0x31c   :  { %1243 = shalt.err (!%p1240_p8)
}
 0x31d   :  { %s1244_s9 = scalar_lea.hbm %s1413_s7, 128 }
 0x31e   :  { %p1245_p9 = scmp.ne.s32.totalorder %s1413_s7, %s1244_s9  ;;  %p1248_p10 = scmp.lt.u32.totalorder %s1244_s9, %s1413_s7 }
 0x320   :  { %p1250_p11 = pnand %p1248_p10, %p1245_p9 }
 0x322   :  { %1253 = shalt.err (!%p1250_p11)
}
 0x323   :  { %703 = dma.vmem_to_hbm [thread:$0]  %s701_s29, 128, %s1413_s7, [#allocation4]  }
 0x324   :  { %1260 = dma.done.wait [#allocation4], 128  }
 0x325   :  { %1261 = vsyncadd [#allocation4], 4294967168 }
 0x326   :  { %707 = vsyncpa [#allocation3], 1 }
 0x327   :  { %708 = vsyncpa [#allocation6], 1 }
 0x328   :  { %709 = vsyncpa [#allocation9], 1 }
 0x329   :  { %710 = vsyncpa [#allocation4], 1 }

// kernel: tpu_custom_call.1
= control target key start
LH: loop header
LB: loop body
LE: loop exit
PB: predicated region body
PF: predicated region fallthrough
CT: control target
= control target key end

     0   :  { %12 = vsyncpa [#allocation3], 0  ;;  %s1406_s0 = inlined_call_operand.hbm [shape: f32[8,1024], index: 0, kind: input, shape index: {}]   ;;  %s1407_s1 = inlined_call_operand.hbm [shape: f32[1024,128], index: 1, kind: input, shape index: {}]   ;;  %s1408_s2 = inlined_call_operand.vmem [shape: f32[1,128], index: 2, kind: input, shape index: {}]   ;;  %s1409_s3 = inlined_call_operand.hbm [shape: f32[128,128], index: 3, kind: input, shape index: {}]   ;;  %s1410_s4 = inlined_call_operand.vmem [shape: f32[1,128], index: 4, kind: input, shape index: {}]   ;;  %s1411_s5 = inlined_call_operand.hbm [shape: f32[128,128], index: 5, kind: input, shape index: {}]   ;;  %s1412_s6 = inlined_call_operand.vmem [shape: f32[1,128], index: 6, kind: input, shape index: {}]   ;;  %s1413_s7 = inlined_call_operand.hbm [shape: f32[8,128], index: 7, kind: output, shape index: {}]  }
   0x1   :  { %13 = vsyncpa [#allocation6], 0 }
   0x2   :  { %14 = vsyncpa [#allocation9], 0 }
   0x3   :  { %15 = vsyncpa [#allocation4], 0  ;;  %s1262_s24 = smov [#allocation5]   ;;  %s1144_s28 = scalar_lea.hbm %s1407_s1, 16384 }
   0x4   :  { %s31_s25 = sshll.u32 %s1262_s24, 4  ;;  %p1145_p0 = scmp.ne.s32.totalorder %s1407_s1, %s1144_s28  ;;  %s32_s25 = int_to_ptr.vmem [resolvable:$true] %s31_s25 }
   0x5   :  { %p1148_p1 = scmp.lt.u32.totalorder %s1144_s28, %s1407_s1 }
   0x7   :  { %p1150_p2 = pnand %p1148_p1, %p1145_p0 }
   0x9   :  { %1153 = shalt.err (!%p1150_p2)
}
   0xa   :  { %s1154_s10 = scalar_lea.vmem %s32_s25, 16384  ;;  %p1159_p4 = scmp.lt.s32.totalorder %s32_s25, %s32_s25 }
   0xb   :  { %p1155_p3 = scmp.ne.s32.totalorder %s32_s25, %s1154_s10  ;;  %p1160_p5 = scmp.lt.s32.totalorder %s1154_s10, %s1154_s10 }
   0xd   :  { %p1161_p6 = por %p1160_p5, %p1159_p4 }
   0xf   :  { %p1162_p7 = pnand %p1161_p6, %p1155_p3 }
  0x11   :  { %1165 = shalt.err (!%p1162_p7)
}
  0x12   :  { %s1263_s11 = smov 128   ;;  %s1264_s12 = smov 8  }
  0x13   :  { %37 = dma.hbm_to_vmem [thread:$0]  %s1407_s1, 16384, %s32_s25, [#allocation6], %s1263_s11, %s1263_s11, %s1264_s12  }
  0x14   :  { %s1265_s15 = smov [#allocation2]   ;;  %s1266_s17 = smov [#allocation7]  }
  0x15   :  { %s22_s16 = sshll.u32 %s1265_s15, 4  ;;  %s45_s18 = sshll.u32 %s1266_s17, 4  ;;  %s23_s16 = int_to_ptr.vmem [resolvable:$true] %s22_s16  ;;  %s46_s18 = int_to_ptr.vmem [resolvable:$true] %s45_s18 }
  0x16   :  { %s1166_s21 = scalar_lea.hbm %s1406_s0, 1024 }
  0x17   :  { %p1167_p8 = scmp.ne.s32.totalorder %s1406_s0, %s1166_s21  ;;  %p1170_p9 = scmp.lt.u32.totalorder %s1166_s21, %s1406_s0 }
  0x19   :  { %p1172_p10 = pnand %p1170_p9, %p1167_p8 }
  0x1b   :  { %1175 = shalt.err (!%p1172_p10)
}
  0x1c   :  { %s1176_s1 = scalar_lea.vmem %s23_s16, 1024  ;;  %p1181_p12 = scmp.lt.s32.totalorder %s23_s16, %s23_s16 }
  0x1d   :  { %p1177_p11 = scmp.ne.s32.totalorder %s23_s16, %s1176_s1  ;;  %p1182_p13 = scmp.lt.s32.totalorder %s1176_s1, %s1176_s1 }
  0x1f   :  { %p1183_p0 = por %p1182_p13, %p1181_p12 }
  0x21   :  { %p1184_p1 = pnand %p1183_p0, %p1177_p11 }
  0x23   :  { %1187 = shalt.err (!%p1184_p1)
}
  0x24   :  { %25 = dma.hbm_to_vmem [thread:$0]  %s1406_s0, 1024, %s23_s16, [#allocation3]  }
  0x25   :  { %s1188_s30 = scalar_lea.hbm %s1409_s3, 2048 }
  0x26   :  { %p1189_p2 = scmp.ne.s32.totalorder %s1409_s3, %s1188_s30  ;;  %p1192_p3 = scmp.lt.u32.totalorder %s1188_s30, %s1409_s3 }
  0x28   :  { %p1194_p4 = pnand %p1192_p3, %p1189_p2 }
  0x2a   :  { %1197 = shalt.err (!%p1194_p4)
}
  0x2b   :  { %s1198_s14 = scalar_lea.vmem %s46_s18, 2048  ;;  %p1203_p6 = scmp.lt.s32.totalorder %s46_s18, %s46_s18 }
  0x2c   :  { %p1199_p5 = scmp.ne.s32.totalorder %s46_s18, %s1198_s14  ;;  %p1204_p7 = scmp.lt.s32.totalorder %s1198_s14, %s1198_s14 }
  0x2e   :  { %p1205_p8 = por %p1204_p7, %p1203_p6 }
  0x30   :  { %p1206_p9 = pnand %p1205_p8, %p1199_p5 }
  0x32   :  { %1209 = shalt.err (!%p1206_p9)
}
  0x33   :  { %51 = dma.hbm_to_vmem [thread:$0]  %s1409_s3, 2048, %s46_s18, [#allocation6], %s1263_s11, %s1263_s11, %s1264_s12  }
  0x34   :  { %s1267_s16 = smov [#allocation8]   ;;  %s1210_s21 = scalar_lea.hbm %s1411_s5, 2048 }
  0x35   :  { %s59_s17 = sshll.u32 %s1267_s16, 4  ;;  %p1211_p10 = scmp.ne.s32.totalorder %s1411_s5, %s1210_s21  ;;  %s60_s17 = int_to_ptr.vmem [resolvable:$true] %s59_s17 }
  0x36   :  { %p1214_p11 = scmp.lt.u32.totalorder %s1210_s21, %s1411_s5 }
  0x38   :  { %p1216_p12 = pnand %p1214_p11, %p1211_p10 }
  0x3a   :  { %1219 = shalt.err (!%p1216_p12)
}
  0x3b   :  { %s1220_s1 = scalar_lea.vmem %s60_s17, 2048  ;;  %p1225_p0 = scmp.lt.s32.totalorder %s60_s17, %s60_s17 }
  0x3c   :  { %p1221_p13 = scmp.ne.s32.totalorder %s60_s17, %s1220_s1  ;;  %p1226_p1 = scmp.lt.s32.totalorder %s1220_s1, %s1220_s1 }
  0x3e   :  { %p1227_p2 = por %p1226_p1, %p1225_p0 }
  0x40   :  { %p1228_p3 = pnand %p1227_p2, %p1221_p13 }
  0x42   :  { %1231 = shalt.err (!%p1228_p3)
}
  0x43   :  { %65 = dma.hbm_to_vmem [thread:$0]  %s1411_s5, 2048, %s60_s17, [#allocation9], %s1263_s11, %s1263_s11, %s1264_s12  }
  0x44   :  { %1254 = dma.done.wait [#allocation3], 1024  }
  0x45   :  { %1255 = vsyncadd [#allocation3], 4294966272 }
  0x46   :  { %1256 = dma.done.wait [#allocation6], 18432  }
  0x47   :  { %1257 = vsyncadd [#allocation6], 4294948864 }
  0x48   :  { %1258 = dma.done.wait [#allocation9], 2048  }
  0x49   :  { %1259 = vsyncadd [#allocation9], 4294965248  ;;  %v104_v0 = vld [vmem:[#allocation5 + $0x80] sm:$0xff]  ;;  %v105_v1 = vld [vmem:[#allocation5 + $0x88] sm:$0xff]  ;;  %vm1269_vm0 = vmmov 0   ;;  %s1271_s28 = smov [#allocation10]  }
  0x4a   :  { %v88_v2 = vld [vmem:[#allocation5] sm:$0xff]  ;;  %v958_v3 = vpack.c.bf16 %v105_v1, %v104_v0  ;;  %v89_v4 = vld [vmem:[#allocation5 + $0x8] sm:$0xff]  ;;  %v106_v11 = vld [vmem:[#allocation5 + $0x90] sm:$0xff]  ;;  %s700_s29 = sshll.u32 %s1271_s28, 4  ;;  %s701_s29 = int_to_ptr.vmem [resolvable:$true] %s700_s29 }
  0x4b   :  { %v136_v5 = vld [vmem:[#allocation5 + $0x180] sm:$0xff]  ;;  %v137_v6 = vld [vmem:[#allocation5 + $0x188] sm:$0xff]  ;;  %v960_v7 = vpack.c.bf16 %v89_v4, %v88_v2  ;;  %v107_v13 = vld [vmem:[#allocation5 + $0x98] sm:$0xff]  ;;  %s1232_s30 = scalar_lea.vmem %s701_s29, 128  ;;  %p1237_p5 = scmp.lt.s32.totalorder %s701_s29, %s701_s29 }
  0x4c   :  { %v990_v8 = vpack.c.bf16 %v137_v6, %v136_v5  ;;  %v120_v9 = vld [vmem:[#allocation5 + $0x100] sm:$0xff]  ;;  %v121_v10 = vld [vmem:[#allocation5 + $0x108] sm:$0xff]  ;;  %959 = vmatprep.subr.bf16.mxu0 %v958_v3  ;;  %v90_v14 = vld [vmem:[#allocation5 + $0x10] sm:$0xff]  ;;  %v962_v16 = vpack.c.bf16 %v107_v13, %v106_v11  ;;  %p1233_p4 = scmp.ne.s32.totalorder %s701_s29, %s1232_s30  ;;  %p1238_p6 = scmp.lt.s32.totalorder %s1232_s30, %s1232_s30 }
  0x4d   :  { %v992_v12 = vpack.c.bf16 %v121_v10, %v120_v9  ;;  %v91_v15 = vld [vmem:[#allocation5 + $0x18] sm:$0xff]  ;;  %961 = vmatpush3.bf16.msra.mxu0 %v960_v7  ;;  %v138_v18 = vld [vmem:[#allocation5 + $0x190] sm:$0xff]  ;;  %v108_v23 = vld [vmem:[#allocation5 + $0xa0] sm:$0xff] }
  0x4e   :  { %991 = vmatprep.subr.bf16.mxu1 %v990_v8  ;;  %v964_v17 = vpack.c.bf16 %v91_v15, %v90_v14  ;;  %v139_v19 = vld [vmem:[#allocation5 + $0x198] sm:$0xff]  ;;  %v122_v20 = vld [vmem:[#allocation5 + $0x110] sm:$0xff]  ;;  %v109_v24 = vld [vmem:[#allocation5 + $0xa8] sm:$0xff]  ;;  %963 = vmatprep.subr.bf16.mxu0 %v962_v16  ;;  %p1239_p7 = por %p1238_p6, %p1237_p5 }
  0x4f   :  { %993 = vmatpush3.bf16.msra.mxu1 %v992_v12  ;;  %v994_v21 = vpack.c.bf16 %v139_v19, %v138_v18  ;;  %v123_v22 = vld [vmem:[#allocation5 + $0x118] sm:$0xff]  ;;  %v966_v26 = vpack.c.bf16 %v109_v24, %v108_v23  ;;  %v92_v27 = vld [vmem:[#allocation5 + $0x20] sm:$0xff]  ;;  %v93_v28 = vld [vmem:[#allocation5 + $0x28] sm:$0xff] }
  0x50   :  { %v996_v25 = vpack.c.bf16 %v123_v22, %v122_v20  ;;  %v140_v29 = vld [vmem:[#allocation5 + $0x1a0] sm:$0xff]  ;;  %v141_v30 = vld [vmem:[#allocation5 + $0x1a8] sm:$0xff]  ;;  %v968_v33 = vpack.c.bf16 %v93_v28, %v92_v27  ;;  %v110_v35 = vld [vmem:[#allocation5 + $0xb0] sm:$0xff]  ;;  %p1240_p8 = pnand %p1239_p7, %p1233_p4 }
  0x51   :  { %995 = vmatprep.subr.bf16.mxu1 %v994_v21  ;;  %v124_v31 = vld [vmem:[#allocation5 + $0x120] sm:$0xff]  ;;  %v125_v32 = vld [vmem:[#allocation5 + $0x128] sm:$0xff]  ;;  %965 = vmatpush3.bf16.msra.mxu0 %v964_v17  ;;  %v998_v34 = vpack.c.bf16 %v141_v30, %v140_v29  ;;  %v111_v36 = vld [vmem:[#allocation5 + $0xb8] sm:$0xff] }
  0x52   :  { %v94_v37 = vld [vmem:[#allocation5 + $0x30] sm:$0xff]  ;;  %967 = vmatprep.subr.bf16.mxu0 %v966_v26  ;;  %v1000_v38 = vpack.c.bf16 %v125_v32, %v124_v31  ;;  %v970_v39 = vpack.c.bf16 %v111_v36, %v110_v35  ;;  %v95_v40 = vld [vmem:[#allocation5 + $0x38] sm:$0xff]  ;;  %v112_v46 = vld [vmem:[#allocation5 + $0xc0] sm:$0xff] }
  0x53   :  { %997 = vmatpush3.bf16.msra.mxu1 %v996_v25  ;;  %v142_v41 = vld [vmem:[#allocation5 + $0x1b0] sm:$0xff]  ;;  %v143_v42 = vld [vmem:[#allocation5 + $0x1b8] sm:$0xff]  ;;  %v113_v47 = vld [vmem:[#allocation5 + $0xc8] sm:$0xff]  ;;  %v972_v48 = vpack.c.bf16 %v95_v40, %v94_v37 }
  0x54   :  { %999 = vmatprep.subr.bf16.mxu1 %v998_v34  ;;  %v1002_v43 = vpack.c.bf16 %v143_v42, %v142_v41  ;;  %v126_v44 = vld [vmem:[#allocation5 + $0x130] sm:$0xff]  ;;  %v127_v45 = vld [vmem:[#allocation5 + $0x138] sm:$0xff]  ;;  %v144_v49 = vld [vmem:[#allocation5 + $0x1c0] sm:$0xff]  ;;  %v974_v52 = vpack.c.bf16 %v113_v47, %v112_v46 }
  0x55   :  { %969 = vmatpush3.bf16.msra.mxu0 %v968_v33  ;;  %v145_v50 = vld [vmem:[#allocation5 + $0x1c8] sm:$0xff]  ;;  %v1004_v51 = vpack.c.bf16 %v127_v45, %v126_v44  ;;  %v96_v53 = vld [vmem:[#allocation5 + $0x40] sm:$0xff]  ;;  %v114_v58 = vld [vmem:[#allocation5 + $0xd0] sm:$0xff] }
  0x56   :  { %971 = vmatprep.subr.bf16.mxu0 %v970_v39  ;;  %v97_v54 = vld [vmem:[#allocation5 + $0x48] sm:$0xff]  ;;  %v128_v55 = vld [vmem:[#allocation5 + $0x140] sm:$0xff]  ;;  %v1006_v56 = vpack.c.bf16 %v145_v50, %v144_v49  ;;  %v115_v59 = vld [vmem:[#allocation5 + $0xd8] sm:$0xff] }
  0x57   :  { %1001 = vmatpush3.bf16.msra.mxu1 %v1000_v38  ;;  %v129_v57 = vld [vmem:[#allocation5 + $0x148] sm:$0xff]  ;;  %v146_v60 = vld [vmem:[#allocation5 + $0x1d0] sm:$0xff]  ;;  %v147_v61 = vld [vmem:[#allocation5 + $0x1d8] sm:$0xff]  ;;  %v976_v62 = vpack.c.bf16 %v97_v54, %v96_v53  ;;  %v978_v0 = vpack.c.bf16 %v115_v59, %v114_v58 }
  0x58   :  { %1003 = vmatprep.subr.bf16.mxu1 %v1002_v43  ;;  %v1008_v63 = vpack.c.bf16 %v129_v57, %v128_v55  ;;  %v98_v1 = vld [vmem:[#allocation5 + $0x50] sm:$0xff]  ;;  %v99_v2 = vld [vmem:[#allocation5 + $0x58] sm:$0xff]  ;;  %v1010_v4 = vpack.c.bf16 %v147_v61, %v146_v60  ;;  %v116_v6 = vld [vmem:[#allocation5 + $0xe0] sm:$0xff] }
  0x59   :  { %973 = vmatpush3.bf16.msra.mxu0 %v972_v48  ;;  %v130_v3 = vld [vmem:[#allocation5 + $0x150] sm:$0xff]  ;;  %v131_v5 = vld [vmem:[#allocation5 + $0x158] sm:$0xff]  ;;  %v117_v7 = vld [vmem:[#allocation5 + $0xe8] sm:$0xff]  ;;  %v980_v10 = vpack.c.bf16 %v99_v2, %v98_v1 }
  0x5a   :  { %975 = vmatprep.subr.bf16.mxu0 %v974_v52  ;;  %v148_v8 = vld [vmem:[#allocation5 + $0x1e0] sm:$0xff]  ;;  %v149_v9 = vld [vmem:[#allocation5 + $0x1e8] sm:$0xff]  ;;  %v1012_v13 = vpack.c.bf16 %v131_v5, %v130_v3  ;;  %v982_v14 = vpack.c.bf16 %v117_v7, %v116_v6  ;;  %v118_v19 = vld [vmem:[#allocation5 + $0xf0] sm:$0xff] }
  0x5b   :  { %1005 = vmatpush3.bf16.msra.mxu1 %v1004_v51  ;;  %v100_v11 = vld [vmem:[#allocation5 + $0x60] sm:$0xff]  ;;  %v101_v12 = vld [vmem:[#allocation5 + $0x68] sm:$0xff]  ;;  %v1014_v18 = vpack.c.bf16 %v149_v9, %v148_v8  ;;  %v119_v20 = vld [vmem:[#allocation5 + $0xf8] sm:$0xff] }
  0x5c   :  { %1007 = vmatprep.subr.bf16.mxu1 %v1006_v56  ;;  %v132_v15 = vld [vmem:[#allocation5 + $0x160] sm:$0xff]  ;;  %v133_v16 = vld [vmem:[#allocation5 + $0x168] sm:$0xff]  ;;  %v83_v21 = vld [vmem:[#allocation2 + $0x18] sm:$0xff]  ;;  %v984_v24 = vpack.c.bf16 %v101_v12, %v100_v11  ;;  %v986_v26 = vpack.c.bf16 %v119_v20, %v118_v19 }
  0x5d   :  { %977 = vmatpush3.bf16.msra.mxu0 %v976_v62  ;;  %v81_v17 = vld [vmem:[#allocation2 + $0x8] sm:$0xff]  ;;  %v150_v22 = vld [vmem:[#allocation5 + $0x1f0] sm:$0xff]  ;;  %v151_v23 = vld [vmem:[#allocation5 + $0x1f8] sm:$0xff]  ;;  %357 = vmatprep.mubr.f32.mxu1 %v83_v21  ;;  %v1016_v25 = vpack.c.bf16 %v133_v16, %v132_v15 }
  0x5e   :  { %979 = vmatprep.subr.bf16.mxu0 %v978_v0  ;;  %287 = vmatprep.mubr.f32.mxu0 %v81_v17  ;;  %v102_v27 = vld [vmem:[#allocation5 + $0x70] sm:$0xff]  ;;  %v103_v28 = vld [vmem:[#allocation5 + $0x78] sm:$0xff]  ;;  %v1018_v30 = vpack.c.bf16 %v151_v23, %v150_v22  ;;  %v168_v32 = vld [vmem:[#allocation5 + $0x280] sm:$0xff] }
  0x5f   :  { %1009 = vmatpush3.bf16.msra.mxu1 %v1008_v63  ;;  %v134_v29 = vld [vmem:[#allocation5 + $0x170] sm:$0xff]  ;;  %v135_v31 = vld [vmem:[#allocation5 + $0x178] sm:$0xff]  ;;  %v169_v33 = vld [vmem:[#allocation5 + $0x288] sm:$0xff]  ;;  %v988_v36 = vpack.c.bf16 %v103_v28, %v102_v27 }
  0x60   :  { %1011 = vmatprep.subr.bf16.mxu1 %v1010_v4  ;;  %v200_v34 = vld [vmem:[#allocation5 + $0x380] sm:$0xff]  ;;  %v201_v35 = vld [vmem:[#allocation5 + $0x388] sm:$0xff]  ;;  %v1020_v37 = vpack.c.bf16 %v135_v31, %v134_v29  ;;  %v1022_v38 = vpack.c.bf16 %v169_v33, %v168_v32  ;;  %v170_v44 = vld [vmem:[#allocation5 + $0x290] sm:$0xff] }
  0x61   :  { %981 = vmatpush3.bf16.msra.mxu0 %v980_v10  ;;  %v152_v39 = vld [vmem:[#allocation5 + $0x200] sm:$0xff]  ;;  %v153_v40 = vld [vmem:[#allocation5 + $0x208] sm:$0xff]  ;;  %v1054_v42 = vpack.c.bf16 %v201_v35, %v200_v34  ;;  %v171_v45 = vld [vmem:[#allocation5 + $0x298] sm:$0xff] }
  0x62   :  { %983 = vmatprep.subr.bf16.mxu0 %v982_v14  ;;  %v184_v41 = vld [vmem:[#allocation5 + $0x300] sm:$0xff]  ;;  %v185_v43 = vld [vmem:[#allocation5 + $0x308] sm:$0xff]  ;;  %v202_v46 = vld [vmem:[#allocation5 + $0x390] sm:$0xff]  ;;  %v1024_v49 = vpack.c.bf16 %v153_v40, %v152_v39  ;;  %v1026_v52 = vpack.c.bf16 %v171_v45, %v170_v44 }
  0x63   :  { %1013 = vmatpush3.bf16.msra.mxu1 %v1012_v13  ;;  %v203_v47 = vld [vmem:[#allocation5 + $0x398] sm:$0xff]  ;;  %v80_v48 = vld [vmem:[#allocation2] sm:$0xff]  ;;  %v82_v50 = vld [vmem:[#allocation2 + $0x10] sm:$0xff]  ;;  %v1056_v51 = vpack.c.bf16 %v185_v43, %v184_v41 }
  0x64   :  { %1015 = vmatprep.subr.bf16.mxu1 %v1014_v18  ;;  %v154_v53 = vld [vmem:[#allocation5 + $0x210] sm:$0xff]  ;;  %v155_v54 = vld [vmem:[#allocation5 + $0x218] sm:$0xff]  ;;  %v1058_v56 = vpack.c.bf16 %v203_v47, %v202_v46  ;;  %v172_v58 = vld [vmem:[#allocation5 + $0x2a0] sm:$0xff] }
  0x65   :  { %985 = vmatpush3.bf16.msra.mxu0 %v984_v24  ;;  %v186_v55 = vld [vmem:[#allocation5 + $0x310] sm:$0xff]  ;;  %v187_v57 = vld [vmem:[#allocation5 + $0x318] sm:$0xff]  ;;  %v173_v59 = vld [vmem:[#allocation5 + $0x2a8] sm:$0xff]  ;;  %v1028_v62 = vpack.c.bf16 %v155_v54, %v154_v53 }
  0x66   :  { %987 = vmatprep.subr.bf16.mxu0 %v986_v26  ;;  %v204_v60 = vld [vmem:[#allocation5 + $0x3a0] sm:$0xff]  ;;  %v205_v61 = vld [vmem:[#allocation5 + $0x3a8] sm:$0xff]  ;;  %v1060_v63 = vpack.c.bf16 %v187_v57, %v186_v55  ;;  %v1030_v0 = vpack.c.bf16 %v173_v59, %v172_v58  ;;  %v174_v6 = vld [vmem:[#allocation5 + $0x2b0] sm:$0xff] }
  0x67   :  { %1017 = vmatpush3.bf16.msra.mxu1 %v1016_v25  ;;  %v156_v1 = vld [vmem:[#allocation5 + $0x220] sm:$0xff]  ;;  %v157_v2 = vld [vmem:[#allocation5 + $0x228] sm:$0xff]  ;;  %v1062_v4 = vpack.c.bf16 %v205_v61, %v204_v60  ;;  %v175_v7 = vld [vmem:[#allocation5 + $0x2b8] sm:$0xff] }
  0x68   :  { %1019 = vmatprep.subr.bf16.mxu1 %v1018_v30  ;;  %v188_v3 = vld [vmem:[#allocation5 + $0x320] sm:$0xff]  ;;  %v189_v5 = vld [vmem:[#allocation5 + $0x328] sm:$0xff]  ;;  %v206_v8 = vld [vmem:[#allocation5 + $0x3b0] sm:$0xff]  ;;  %v1032_v10 = vpack.c.bf16 %v157_v2, %v156_v1  ;;  %v1034_v12 = vpack.c.bf16 %v175_v7, %v174_v6 }
  0x69   :  { %989 = vmatpush3.bf16.msra.mxu0 %v988_v36  ;;  %v207_v9 = vld [vmem:[#allocation5 + $0x3b8] sm:$0xff]  ;;  %v1064_v11 = vpack.c.bf16 %v189_v5, %v188_v3  ;;  %v158_v13 = vld [vmem:[#allocation5 + $0x230] sm:$0xff]  ;;  %v176_v18 = vld [vmem:[#allocation5 + $0x2c0] sm:$0xff] }
  0x6a   :  { %1023 = vmatprep.subr.bf16.mxu0 %v1022_v38  ;;  %v159_v14 = vld [vmem:[#allocation5 + $0x238] sm:$0xff]  ;;  %v190_v15 = vld [vmem:[#allocation5 + $0x330] sm:$0xff]  ;;  %v1066_v16 = vpack.c.bf16 %v207_v9, %v206_v8  ;;  %v177_v19 = vld [vmem:[#allocation5 + $0x2c8] sm:$0xff] }
  0x6b   :  { %1021 = vmatpush3.bf16.msra.mxu1 %v1020_v37  ;;  %v191_v17 = vld [vmem:[#allocation5 + $0x338] sm:$0xff]  ;;  %v208_v20 = vld [vmem:[#allocation5 + $0x3c0] sm:$0xff]  ;;  %v209_v21 = vld [vmem:[#allocation5 + $0x3c8] sm:$0xff]  ;;  %v1036_v22 = vpack.c.bf16 %v159_v14, %v158_v13  ;;  %v1038_v26 = vpack.c.bf16 %v177_v19, %v176_v18 }
  0x6c   :  { %1055 = vmatprep.subr.bf16.mxu1 %v1054_v42  ;;  %288 = vmatmul.mubr.f32.vlgmr.msra.gmra.mrb[0].mxu0 %v80_v48  ;;  %v85_v23 = vld [vmem:[#allocation2 + $0x28] sm:$0xff]  ;;  %v87_v24 = vld [vmem:[#allocation2 + $0x38] sm:$0xff]  ;;  %v1068_v25 = vpack.c.bf16 %v191_v17, %v190_v15  ;;  %v160_v27 = vld [vmem:[#allocation5 + $0x240] sm:$0xff]  ;;  %v1070_v30 = vpack.c.bf16 %v209_v21, %v208_v20 }
  0x6d   :  { %1025 = vmatpush3.bf16.msra.mxu0 %v1024_v49  ;;  %v161_v28 = vld [vmem:[#allocation5 + $0x248] sm:$0xff]  ;;  %v192_v29 = vld [vmem:[#allocation5 + $0x340] sm:$0xff]  ;;  %v178_v32 = vld [vmem:[#allocation5 + $0x2d0] sm:$0xff]  ;;  %427 = vmatprep.mubr.f32.mxu0 %v85_v23 }
  0x6e   :  { %358 = vmatmul.mubr.f32.vlgmr.msra.gmra.mrb[0].mxu1 %v82_v50  ;;  %1027 = vmatprep.subr.bf16.mxu0 %v1026_v52  ;;  %v193_v31 = vld [vmem:[#allocation5 + $0x348] sm:$0xff]  ;;  %v179_v33 = vld [vmem:[#allocation5 + $0x2d8] sm:$0xff]  ;;  %v210_v34 = vld [vmem:[#allocation5 + $0x3d0] sm:$0xff]  ;;  %v1040_v36 = vpack.c.bf16 %v161_v28, %v160_v27 }
  0x6f   :  { %1057 = vmatpush3.bf16.msra.mxu1 %v1056_v51  ;;  %v211_v35 = vld [vmem:[#allocation5 + $0x3d8] sm:$0xff]  ;;  %497 = vmatprep.mubr.f32.mxu1 %v87_v24  ;;  %v1072_v37 = vpack.c.bf16 %v193_v31, %v192_v29  ;;  %v1042_v38 = vpack.c.bf16 %v179_v33, %v178_v32  ;;  %v162_v39 = vld [vmem:[#allocation5 + $0x250] sm:$0xff]  ;;  %v180_v44 = vld [vmem:[#allocation5 + $0x2e0] sm:$0xff]  ;;  %v1270_v33 = vmov 0.0  }
  0x70   :  { %1059 = vmatprep.subr.bf16.mxu1 %v1058_v56  ;;  %v163_v40 = vld [vmem:[#allocation5 + $0x258] sm:$0xff]  ;;  %v194_v41 = vld [vmem:[#allocation5 + $0x350] sm:$0xff]  ;;  %v1074_v42 = vpack.c.bf16 %v211_v35, %v210_v34  ;;  %v181_v45 = vld [vmem:[#allocation5 + $0x2e8] sm:$0xff] }
  0x71   :  { %1029 = vmatpush3.bf16.msra.mxu0 %v1028_v62  ;;  %v195_v43 = vld [vmem:[#allocation5 + $0x358] sm:$0xff]  ;;  %v212_v46 = vld [vmem:[#allocation5 + $0x3e0] sm:$0xff]  ;;  %v213_v47 = vld [vmem:[#allocation5 + $0x3e8] sm:$0xff]  ;;  %v1044_v48 = vpack.c.bf16 %v163_v40, %v162_v39  ;;  %v1046_v50 = vpack.c.bf16 %v181_v45, %v180_v44 }
  0x72   :  { %1031 = vmatprep.subr.bf16.mxu0 %v1030_v0  ;;  %v1076_v49 = vpack.c.bf16 %v195_v43, %v194_v41  ;;  %v164_v51 = vld [vmem:[#allocation5 + $0x260] sm:$0xff]  ;;  %v165_v52 = vld [vmem:[#allocation5 + $0x268] sm:$0xff]  ;;  %v1078_v54 = vpack.c.bf16 %v213_v47, %v212_v46  ;;  %v182_v56 = vld [vmem:[#allocation5 + $0x2f0] sm:$0xff] }
  0x73   :  { %1061 = vmatpush3.bf16.msra.mxu1 %v1060_v63  ;;  %v196_v53 = vld [vmem:[#allocation5 + $0x360] sm:$0xff]  ;;  %v197_v55 = vld [vmem:[#allocation5 + $0x368] sm:$0xff]  ;;  %v183_v57 = vld [vmem:[#allocation5 + $0x2f8] sm:$0xff]  ;;  %v1048_v60 = vpack.c.bf16 %v165_v52, %v164_v51 }
  0x74   :  { %1063 = vmatprep.subr.bf16.mxu1 %v1062_v4  ;;  %v214_v58 = vld [vmem:[#allocation5 + $0x3f0] sm:$0xff]  ;;  %v215_v59 = vld [vmem:[#allocation5 + $0x3f8] sm:$0xff]  ;;  %v1080_v61 = vpack.c.bf16 %v197_v55, %v196_v53  ;;  %v1050_v62 = vpack.c.bf16 %v183_v57, %v182_v56  ;;  %v84_v6 = vld [vmem:[#allocation2 + $0x20] sm:$0xff] }
  0x75   :  { %1033 = vmatpush3.bf16.msra.mxu0 %v1032_v10  ;;  %v166_v63 = vld [vmem:[#allocation5 + $0x270] sm:$0xff]  ;;  %v167_v0 = vld [vmem:[#allocation5 + $0x278] sm:$0xff]  ;;  %v1082_v1 = vpack.c.bf16 %v215_v59, %v214_v58  ;;  %v505_v8 = vld [vmem:[#allocation7] sm:$0xff] }
  0x76   :  { %1035 = vmatprep.subr.bf16.mxu0 %v1034_v12  ;;  %v198_v2 = vld [vmem:[#allocation5 + $0x370] sm:$0xff]  ;;  %v199_v3 = vld [vmem:[#allocation5 + $0x378] sm:$0xff]  ;;  %v1052_v4 = vpack.c.bf16 %v167_v0, %v166_v63  ;;  %v506_v9 = vld [vmem:[#allocation7 + $0x8] sm:$0xff] }
  0x77   :  { %1065 = vmatpush3.bf16.msra.mxu1 %v1064_v11  ;;  %v1084_v5 = vpack.c.bf16 %v199_v3, %v198_v2  ;;  %v86_v7 = vld [vmem:[#allocation2 + $0x30] sm:$0xff]  ;;  %v1268_v11 = vmov 0.0|0.0   ;;  %v1087_v12 = vpack.c.bf16 %v506_v9, %v505_v8  ;;  %v508_v13 = vld [vmem:[#allocation7 + $0x18] sm:$0xff]  ;;  %v509_v15 = vld [vmem:[#allocation7 + $0x20] sm:$0xff] }
  0x78   :  { %1067 = vmatprep.subr.bf16.mxu1 %v1066_v16  ;;  %v507_v10 = vld [vmem:[#allocation7 + $0x10] sm:$0xff]  ;;  %v510_v16 = vld [vmem:[#allocation7 + $0x28] sm:$0xff]  ;;  %v512_v19 = vld [vmem:[#allocation7 + $0x38] sm:$0xff] }
  0x79   :  { %1037 = vmatpush3.bf16.msra.mxu0 %v1036_v22  ;;  %v1090_v14 = vpack.c.bf16 %v508_v13, %v507_v10  ;;  %v1093_v17 = vpack.c.bf16 %v510_v16, %v509_v15  ;;  %v511_v18 = vld [vmem:[#allocation7 + $0x30] sm:$0xff]  ;;  %v513_v21 = vld [vmem:[#allocation7 + $0x40] sm:$0xff]  ;;  %v514_v22 = vld [vmem:[#allocation7 + $0x48] sm:$0xff] }
  0x7a   :  { %1039 = vmatprep.subr.bf16.mxu0 %v1038_v26  ;;  %v1096_v20 = vpack.c.bf16 %v512_v19, %v511_v18  ;;  %v1099_v23 = vpack.c.bf16 %v514_v22, %v513_v21  ;;  %v515_v24 = vld [vmem:[#allocation7 + $0x50] sm:$0xff]  ;;  %v517_v27 = vld [vmem:[#allocation7 + $0x60] sm:$0xff]  ;;  %v518_v28 = vld [vmem:[#allocation7 + $0x68] sm:$0xff] }
  0x7b   :  { %1069 = vmatpush3.bf16.msra.mxu1 %v1068_v25  ;;  %v516_v25 = vld [vmem:[#allocation7 + $0x58] sm:$0xff]  ;;  %v1105_v29 = vpack.c.bf16 %v518_v28, %v517_v27  ;;  %v600_v34 = vld [vmem:[#allocation8] sm:$0xff]  ;;  %v601_v35 = vld [vmem:[#allocation8 + $0x8] sm:$0xff] }
  0x7c   :  { %1071 = vmatprep.subr.bf16.mxu1 %v1070_v30  ;;  %v1102_v26 = vpack.c.bf16 %v516_v25, %v515_v24  ;;  %v519_v30 = vld [vmem:[#allocation7 + $0x70] sm:$0xff]  ;;  %v520_v31 = vld [vmem:[#allocation7 + $0x78] sm:$0xff]  ;;  %v604_v40 = vld [vmem:[#allocation8 + $0x20] sm:$0xff] }
  0x7d   :  { %1041 = vmatpush3.bf16.msra.mxu0 %v1040_v36  ;;  %v1108_v32 = vpack.c.bf16 %v520_v31, %v519_v30  ;;  %v602_v36 = vld [vmem:[#allocation8 + $0x10] sm:$0xff]  ;;  %v605_v41 = vld [vmem:[#allocation8 + $0x28] sm:$0xff]  ;;  %v607_v44 = vld [vmem:[#allocation8 + $0x38] sm:$0xff] }
  0x7e   :  { %1043 = vmatprep.subr.bf16.mxu0 %v1042_v38  ;;  %v603_v38 = vld [vmem:[#allocation8 + $0x18] sm:$0xff]  ;;  %v606_v43 = vld [vmem:[#allocation8 + $0x30] sm:$0xff]  ;;  %v608_v46 = vld [vmem:[#allocation8 + $0x40] sm:$0xff] }
  0x7f   :  { %1073 = vmatpush3.bf16.msra.mxu1 %v1072_v37  ;;  %v1111_v37 = vpack.c.bf16 %v601_v35, %v600_v34  ;;  %v1114_v39 = vpack.c.bf16 %v603_v38, %v602_v36  ;;  %v1120_v45 = vpack.c.bf16 %v607_v44, %v606_v43  ;;  %v609_v47 = vld [vmem:[#allocation8 + $0x48] sm:$0xff]  ;;  %v711_v53 = vld [vmem:[%s1408_s2] ss:$0 sm:$0xff]  ;;  %v614_v10 = vld [vmem:[#allocation8 + $0x70] sm:$0xff] }
  0x80   :  { %1075 = vmatprep.subr.bf16.mxu1 %v1074_v42  ;;  %v1117_v42 = vpack.c.bf16 %v605_v41, %v604_v40  ;;  %v613_v8 = vld [vmem:[#allocation8 + $0x68] sm:$0xff] }
  0x81   :  { %1045 = vmatpush3.bf16.msra.mxu0 %v1044_v48  ;;  %v1123_v48 = vpack.c.bf16 %v609_v47, %v608_v46 }
  0x82   :  { %1047 = vmatprep.subr.bf16.mxu0 %v1046_v50  ;;  %v611_v50 = vld [vmem:[#allocation8 + $0x58] sm:$0xff] }
  0x83   :  { %1077 = vmatpush3.bf16.msra.mxu1 %v1076_v49  ;;  %v610_v49 = vld [vmem:[#allocation8 + $0x50] sm:$0xff] }
  0x84   :  { %1079 = vmatprep.subr.bf16.mxu1 %v1078_v54  ;;  %v1126_v51 = vpack.c.bf16 %v611_v50, %v610_v49 }
  0x85   :  { %1049 = vmatpush3.bf16.msra.mxu0 %v1048_v60 }
  0x86   :  { %1051 = vmatprep.subr.bf16.mxu0 %v1050_v62 }
  0x87   :  { %1081 = vmatpush3.bf16.msra.mxu1 %v1080_v61 }
  0x88   :  { %1083 = vmatprep.subr.bf16.mxu1 %v1082_v1 }
  0x89   :  { %1053 = vmatpush3.bf16.msra.mxu0 %v1052_v4 }
  0x8a   :  { %1086 = vmatprep.subr.bf16.mxu0 %v1268_v11 }
  0x8b   :  { %1085 = vmatpush3.bf16.msra.mxu1 %v1084_v5 }
  0x8c   :  { %428 = vmatmul.mubr.f32.vlgmr.msra.gmra.mrb[2].mxu0 %v84_v6  ;;  %1110 = vmatprep.subr.bf16.mxu1 %v1268_v11 }
  0x8d   :  { %1088 = vmatpush3.bf16.msra.mxu0 %v1087_v12  ;;  %920 = vmatprep.mubr.msk.f32.mxu0 %vm1269_vm0, %v1270_v33  ;;  %v615_v12 = vld [vmem:[#allocation8 + $0x78] sm:$0xff] }
  0x8e   :  { %498 = vmatmul.mubr.f32.vlgmr.msra.gmra.mrb[2].mxu1 %v86_v7  ;;  %1089 = vmatprep.subr.bf16.mxu0 %v1268_v11  ;;  %v612_v7 = vld [vmem:[#allocation8 + $0x60] sm:$0xff]  ;;  %v1132_v13 = vpack.c.bf16 %v615_v12, %v614_v10 }
  0x8f   :  { %955 = vmatprep.mubr.msk.f32.mxu1 %vm1269_vm0, %v1270_v33  ;;  %1112 = vmatpush3.bf16.msra.mxu1 %v1111_v37  ;;  %v1129_v9 = vpack.c.bf16 %v613_v8, %v612_v7 }
  0x90   :  { %1113 = vmatprep.subr.bf16.mxu1 %v1268_v11 }
  0x91   :  { %1091 = vmatpush3.bf16.msra.mxu0 %v1090_v14  ;;  %v712_v14 = vld [vmem:[%s1410_s4] ss:$0 sm:$0xff] }
  0x92   :  { %1092 = vmatprep.subr.bf16.mxu0 %v1268_v11 }
  0x93   :  { %1115 = vmatpush3.bf16.msra.mxu1 %v1114_v39 }
  0x94   :  { %1116 = vmatprep.subr.bf16.mxu1 %v1268_v11 }
  0x95   :  { %1094 = vmatpush3.bf16.msra.mxu0 %v1093_v17 }
  0x96   :  { %1095 = vmatprep.subr.bf16.mxu0 %v1268_v11 }
  0x97   :  { %1118 = vmatpush3.bf16.msra.mxu1 %v1117_v42 }
  0x98   :  { %1119 = vmatprep.subr.bf16.mxu1 %v1268_v11 }
  0x99   :  { %1097 = vmatpush3.bf16.msra.mxu0 %v1096_v20  ;;  %v713_v20 = vld [vmem:[%s1412_s6] ss:$0 sm:$0xff] }
  0x9a   :  { %1098 = vmatprep.subr.bf16.mxu0 %v1268_v11 }
  0x9b   :  { %1121 = vmatpush3.bf16.msra.mxu1 %v1120_v45 }
  0x9c   :  { %1122 = vmatprep.subr.bf16.mxu1 %v1268_v11 }
  0x9d   :  { %1100 = vmatpush3.bf16.msra.mxu0 %v1099_v23 }
  0x9e   :  { %1101 = vmatprep.subr.bf16.mxu0 %v1268_v11 }
  0x9f   :  { %1124 = vmatpush3.bf16.msra.mxu1 %v1123_v48 }
  0xa0   :  { %1125 = vmatprep.subr.bf16.mxu1 %v1268_v11 }
  0xa1   :  { %1103 = vmatpush3.bf16.msra.mxu0 %v1102_v26 }
  0xa2   :  { %1104 = vmatprep.subr.bf16.mxu0 %v1268_v11 }
  0xa3   :  { %1127 = vmatpush3.bf16.msra.mxu1 %v1126_v51 }
  0xa4   :  { %1128 = vmatprep.subr.bf16.mxu1 %v1268_v11 }
  0xa5   :  { %1106 = vmatpush3.bf16.msra.mxu0 %v1105_v29 }
  0xa6   :  { %1107 = vmatprep.subr.bf16.mxu0 %v1268_v11 }
  0xa7   :  { %1130 = vmatpush3.bf16.msra.mxu1 %v1129_v9 }
  0xa8   :  { %1131 = vmatprep.subr.bf16.mxu1 %v1268_v11 }
  0xa9   :  { %1109 = vmatpush3.bf16.msra.mxu0 %v1108_v32 }
  0xab   :  { %1133 = vmatpush3.bf16.msra.mxu1 %v1132_v13 }
 0x13f   :  { %v746_v52 = vpop.f32.mrb[0].mxu0 }
 0x140   :  { %v747_v54 = vpop.f32.mrb[1].mxu0 }
 0x141   :  { %v781_v55 = vpop.f32.mrb[0].mxu1  ;;  %v748_v56 = vadd.f32 %v747_v54, %v746_v52 }
 0x142   :  { %v782_v57 = vpop.f32.mrb[1].mxu1 }
 0x143   :  { %v783_v58 = vadd.f32 %v782_v57, %v781_v55  ;;  %v290_v59 = vadd.f32 %v748_v56, %v711_v53 }
 0x145   :  { %v360_v60 = vadd.f32 %v783_v58, %v290_v59 }
 0x15f   :  { %v816_v61 = vpop.f32.mrb[2].mxu0 }
 0x160   :  { %v817_v62 = vpop.f32.mrb[3].mxu0 }
 0x161   :  { %v851_v63 = vpop.f32.mrb[2].mxu1  ;;  %v818_v0 = vadd.f32 %v817_v62, %v816_v61 }
 0x162   :  { %v852_v1 = vpop.f32.mrb[3].mxu1 }
 0x163   :  { %v853_v2 = vadd.f32 %v852_v1, %v851_v63  ;;  %v430_v3 = vadd.f32 %v818_v0, %v360_v60 }
 0x165   :  { %v500_v4 = vadd.f32 %v853_v2, %v430_v3 }
 0x167   :  { %v503_v5 = vmul.f32 0.01, %v500_v4 }
 0x169   :  { %v504_v6 = vmax.f32 %v500_v4, %v503_v5 }
 0x16b   :  { %921 = vmatmul.mubr.f32.vlgmr.msra.gmra.mrb[4].mxu0 %v504_v6 }
 0x23e   :  { %v594_v15 = vpop.f32.mrb[4].mxu0 }
 0x23f   :  { %v595_v16 = vadd.f32 %v712_v14, %v594_v15  ;;  %v922_v17 = vpop.f32.mrb[5].mxu0 }
 0x241   :  { %v598_v18 = vmul.f32 0.01, %v595_v16 }
 0x243   :  { %v599_v19 = vmax.f32 %v595_v16, %v598_v18 }
 0x245   :  { %956 = vmatmul.mubr.f32.vlgmr.msra.gmra.mrb[4].mxu1 %v599_v19 }
 0x318   :  { %v689_v11 = vpop.f32.mrb[4].mxu1 }
 0x319   :  { %v690_v21 = vadd.f32 %v713_v20, %v689_v11  ;;  %v957_v22 = vpop.f32.mrb[5].mxu1 }
 0x31b   :  { %693 = vst [vmem:[#allocation10] sm:$0xff] %v690_v21 }
 0x31c   :  { %1243 = shalt.err (!%p1240_p8)
}
 0x31d   :  { %s1244_s9 = scalar_lea.hbm %s1413_s7, 128 }
 0x31e   :  { %p1245_p9 = scmp.ne.s32.totalorder %s1413_s7, %s1244_s9  ;;  %p1248_p10 = scmp.lt.u32.totalorder %s1244_s9, %s1413_s7 }
 0x320   :  { %p1250_p11 = pnand %p1248_p10, %p1245_p9 }
 0x322   :  { %1253 = shalt.err (!%p1250_p11)
}
 0x323   :  { %703 = dma.vmem_to_hbm [thread:$0]  %s701_s29, 128, %s1413_s7, [#allocation4]  }
 0x324   :  { %1260 = dma.done.wait [#allocation4], 128  }
 0x325   :  { %1261 = vsyncadd [#allocation4], 4294967168 }
 0x326   :  { %707 = vsyncpa [#allocation3], 1 }
 0x327   :  { %708 = vsyncpa [#allocation6], 1 }
 0x328   :  { %709 = vsyncpa [#allocation9], 1 }
 0x329   :  { %710 = vsyncpa [#allocation4], 1 }

</bundles_post_ra>
